<compile_context>
chip_gen: v7x
topology: tpu7x:2x2x1
jax: 0.10.0
libtpu: 0.0.40
codegen_flags: <defaults>
</compile_context>

<pallas_src>
import functools

import jax
import jax.numpy as jnp
from jax.experimental import pallas as pl
from jax.experimental.pallas import tpu as pltpu


# 48 MiB scoped VMEM is legal on every generation (v7x: 64 MiB physical per
# TensorCore, v5e/v6e: 128 MiB) and far above what our tiles need (< 8 MiB).
_VMEM_LIMIT = 48 * 1024 * 1024


def _round_up(x, m):
    return (x + m - 1) // m * m


def _pick_tile(dim, grain, cap):
    """Largest divisor of `dim` that is a multiple of `grain` and <= cap."""
    best = grain
    t = grain
    stop = min(dim, cap)
    while t <= stop:
        if dim % t == 0:
            best = t
        t += grain
    return best


# ----------------------------- Pallas kernels -----------------------------

def _mm_kernel(x_ref, w_ref, b_ref, *rest, apply_relu, has_residual):
    """Tiled matmul with f32 accumulator; epilogue = +bias [+residual] [ReLU]."""
    if has_residual:
        res_ref, o_ref, acc_ref = rest
    else:
        res_ref = None
        o_ref, acc_ref = rest

    k = pl.program_id(2)

    @pl.when(k == 0)
    def _():
        acc_ref[...] = jnp.zeros_like(acc_ref)

    acc_ref[...] += jnp.dot(x_ref[...], w_ref[...],
                            preferred_element_type=jnp.float32)

    @pl.when(k == pl.num_programs(2) - 1)
    def _():
        r = acc_ref[...] + b_ref[...]
        if has_residual:
            r = r + res_ref[...].astype(jnp.float32)
        if apply_relu:
            r = jnp.maximum(r, 0.0)
        o_ref[...] = r.astype(o_ref.dtype)


def matmul_bias_act(x, w, b, *, relu, residual=None,
                    out_dtype=jnp.bfloat16, n_valid=None):
    """(M,K) @ (Kp,Np) + b, optional fused residual add + ReLU.

    x:        (M, K)   bf16 (K <= Kp; zero-padded here)
    w:        (Kp, Np) bf16 (pre-padded, K/N multiples of 128)
    b:        (1, Np)  f32
    residual: (M, C)   bf16 with C <= Np, fused into the epilogue.
    Returns (M, n_valid) in out_dtype.
    """
    M, K = x.shape
    Kp, Np = w.shape
    if n_valid is None:
        n_valid = Np
    Mp = _round_up(M, 8)

    tm = _pick_tile(Mp, 8, 256)      # 256-row LHS tiles fill the 256x256 MXU
    tn = _pick_tile(Np, 128, 256)    # N-tiling -> work for both v7x cores
    tk = _pick_tile(Kp, 128, 2304)

    xp = x
    if (Mp, Kp) != (M, K):
        xp = jnp.pad(x, ((0, Mp - M), (0, Kp - K)))

    inputs = [xp, w, b]
    in_specs = [
        pl.BlockSpec((tm, tk), lambda i, j, k: (i, k)),
        pl.BlockSpec((tk, tn), lambda i, j, k: (k, j)),
        pl.BlockSpec((1, tn), lambda i, j, k: (0, j)),
    ]
    if residual is not None:
        rM, rC = residual.shape
        rp = residual.astype(jnp.bfloat16)
        if (Mp, Np) != (rM, rC):
            rp = jnp.pad(rp, ((0, Mp - rM), (0, Np - rC)))
        inputs.append(rp)
        in_specs.append(pl.BlockSpec((tm, tn), lambda i, j, k: (i, j)))

    out = pl.pallas_call(
        functools.partial(_mm_kernel, apply_relu=relu,
                          has_residual=residual is not None),
        out_shape=jax.ShapeDtypeStruct((Mp, Np), out_dtype),
        grid_spec=pltpu.PrefetchScalarGridSpec(
            num_scalar_prefetch=0,
            grid=(Mp // tm, Np // tn, Kp // tk),
            in_specs=in_specs,
            out_specs=pl.BlockSpec((tm, tn), lambda i, j, k: (i, j)),
            scratch_shapes=[pltpu.VMEM((tm, tn), jnp.float32)],
        ),
        compiler_params=pltpu.CompilerParams(
            dimension_semantics=("parallel", "parallel", "arbitrary"),
            vmem_limit_bytes=_VMEM_LIMIT,
        ),
    )(*inputs)
    return out[:M, :n_valid]


def _max_rows_kernel(x_ref, o_ref):
    acc = x_ref[0]
    for i in range(1, x_ref.shape[0]):
        acc = jnp.maximum(acc, x_ref[i])
    o_ref[...] = acc


def max_over_leading(x):
    """x: (T, M, C) -> elementwise max over leading axis -> (M, C). Tiled over M."""
    T, M, C = x.shape
    Mp = _round_up(M, 8)
    tm = _pick_tile(Mp, 8, 1024)
    if Mp != M:
        x = jnp.pad(x, ((0, 0), (0, Mp - M), (0, 0)))
    out = pl.pallas_call(
        _max_rows_kernel,
        out_shape=jax.ShapeDtypeStruct((Mp, C), x.dtype),
        grid_spec=pltpu.PrefetchScalarGridSpec(
            num_scalar_prefetch=0,
            grid=(Mp // tm,),
            in_specs=[pl.BlockSpec((T, tm, C), lambda i: (0, i, 0))],
            out_specs=pl.BlockSpec((tm, C), lambda i: (i, 0)),
        ),
        compiler_params=pltpu.CompilerParams(
            dimension_semantics=("parallel",),
            vmem_limit_bytes=_VMEM_LIMIT,
        ),
    )(x)
    return out[:M]


def _mean_rows_kernel(x_ref, o_ref):
    acc = x_ref[0].astype(jnp.float32)
    for i in range(1, x_ref.shape[0]):
        acc = acc + x_ref[i].astype(jnp.float32)
    o_ref[...] = acc * (1.0 / x_ref.shape[0])


def mean_over_leading(x):
    """x: (T, M, C) -> mean over leading axis -> (M, C) f32. Tiled over M."""
    T, M, C = x.shape
    Mp = _round_up(M, 8)
    tm = _pick_tile(Mp, 8, 1024)
    if Mp != M:
        x = jnp.pad(x, ((0, 0), (0, Mp - M), (0, 0)))
    out = pl.pallas_call(
        _mean_rows_kernel,
        out_shape=jax.ShapeDtypeStruct((Mp, C), jnp.float32),
        grid_spec=pltpu.PrefetchScalarGridSpec(
            num_scalar_prefetch=0,
            grid=(Mp // tm,),
            in_specs=[pl.BlockSpec((T, tm, C), lambda i: (0, i, 0))],
            out_specs=pl.BlockSpec((tm, C), lambda i: (i, 0)),
        ),
        compiler_params=pltpu.CompilerParams(
            dimension_semantics=("parallel",),
            vmem_limit_bytes=_VMEM_LIMIT,
        ),
    )(x)
    return out[:M]


# --------------------------- JAX glue (layout only) ------------------------

def _im2col(x, k, stride, pad):
    """NHWC -> (B*Ho*Wo, k*k*C) patch matrix (pure data movement)."""
    # TODO(synk): for large images, fuse this patch gather into the matmul's
    # K grid axis (strided DMA per tap) instead of materializing k*k copies.
    B, H, W, C = x.shape
    Ho = (H + 2 * pad - k) // stride + 1
    Wo = (W + 2 * pad - k) // stride + 1
    xp = jnp.pad(x, ((0, 0), (pad, pad), (pad, pad), (0, 0)))
    cols = []
    for di in range(k):
        for dj in range(k):
            cols.append(jax.lax.slice(
                xp, (0, di, dj, 0),
                (B, di + stride * (Ho - 1) + 1, dj + stride * (Wo - 1) + 1, C),
                (1, stride, stride, 1)))
    patches = jnp.stack(cols, axis=3)  # (B, Ho, Wo, k*k, C)
    return patches.reshape(B * Ho * Wo, k * k * C), Ho, Wo


def conv_bn(x, p, *, k, stride, pad, relu, residual=None):
    """Conv (no bias) + folded eval-mode BN + optional fused residual/ReLU."""
    B = x.shape[0]
    cols, Ho, Wo = _im2col(x, k, stride, pad)
    res2d = None
    if residual is not None:
        res2d = residual.reshape(B * Ho * Wo, residual.shape[-1])
    out = matmul_bias_act(cols, p["w"], p["b"], relu=relu, residual=res2d,
                          out_dtype=jnp.bfloat16, n_valid=p["n"])
    return out.reshape(B, Ho, Wo, p["n"])


def maxpool_3x3_s2(x):
    B, H, W, C = x.shape
    k, stride, pad = 3, 2, 1
    Ho = (H + 2 * pad - k) // stride + 1
    Wo = (W + 2 * pad - k) // stride + 1
    neg = jnp.finfo(x.dtype).min
    xp = jnp.pad(x, ((0, 0), (pad, pad), (pad, pad), (0, 0)),
                 constant_values=neg)
    shifts = []
    for di in range(k):
        for dj in range(k):
            shifts.append(jax.lax.slice(
                xp, (0, di, dj, 0),
                (B, di + stride * (Ho - 1) + 1, dj + stride * (Wo - 1) + 1, C),
                (1, stride, stride, 1)).reshape(B * Ho * Wo, C))
    out = max_over_leading(jnp.stack(shifts, axis=0))
    return out.reshape(B, Ho, Wo, C)


def global_avgpool(x):
    B, H, W, C = x.shape
    xt = jnp.transpose(x, (1, 2, 0, 3)).reshape(H * W, B, C)
    return mean_over_leading(xt)  # (B, C) f32


def basic_block(x, p, *, stride):
    # TODO(synk): at tiny spatial sizes the whole block could be a single
    # pallas_call (launch-latency bound); kept per-conv for generality.
    out = conv_bn(x, p["conv1"], k=3, stride=stride, pad=1, relu=True)
    if "down" in p:
        identity = conv_bn(x, p["down"], k=1, stride=stride, pad=0, relu=False)
    else:
        identity = x
    # Residual add + ReLU fused into conv2's matmul epilogue.
    out = conv_bn(out, p["conv2"], k=3, stride=1, pad=1, relu=True,
                  residual=identity)
    return out


def res_layer(x, blocks, *, stride):
    x = basic_block(x, blocks[0], stride=stride)
    x = basic_block(x, blocks[1], stride=1)
    return x


# ------------------------- deterministic parameters ------------------------

def _pack_matmul_params(w, b):
    """Zero-pad K/N to multiples of 128, cast weights to bf16, bias to f32."""
    K, N = w.shape
    Kp, Np = _round_up(K, 128), _round_up(N, 128)
    wp = jnp.pad(w, ((0, Kp - K), (0, Np - N))).astype(jnp.bfloat16)
    bp = jnp.pad(b, (0, Np - N)).astype(jnp.float32).reshape(1, Np)
    return {"w": wp, "b": bp, "n": N}


def _fold_bn_into_conv(w, gamma, beta, mean, var, eps=1e-5):
    scale = gamma / jnp.sqrt(var + eps)
    k, _, cin, cout = w.shape
    wf = (w * scale).reshape(k * k * cin, cout)
    bf = beta - mean * scale
    return _pack_matmul_params(wf, bf)


def _conv_bn_params(key, cin, cout, k):
    kw, kg, kb, km, kv = jax.random.split(key, 5)
    fan_in = cin * k * k
    w = jax.random.normal(kw, (k, k, cin, cout), jnp.float32) * (2.0 / fan_in) ** 0.5
    gamma = 1.0 + 0.05 * jax.random.normal(kg, (cout,), jnp.float32)
    beta = 0.05 * jax.random.normal(kb, (cout,), jnp.float32)
    mean = 0.05 * jax.random.normal(km, (cout,), jnp.float32)
    var = 1.0 + 0.1 * jax.random.uniform(kv, (cout,), jnp.float32)
    return _fold_bn_into_conv(w, gamma, beta, mean, var)


def _block_params(key, cin, cout, downsample):
    k1, k2, k3 = jax.random.split(key, 3)
    p = {"conv1": _conv_bn_params(k1, cin, cout, 3),
         "conv2": _conv_bn_params(k2, cout, cout, 3)}
    if downsample:
        p["down"] = _conv_bn_params(k3, cin, cout, 1)
    return p


def init_params(key, n_frames=4, n_channels=3, num_classes=1000):
    in_ch = n_frames * n_channels
    keys = jax.random.split(key, 12)
    widths = (64, 128, 256, 512)
    params = {"conv1": _conv_bn_params(keys[0], in_ch, widths[0], 7)}
    cin = widths[0]
    ki = 1
    for li, cout in enumerate(widths, start=1):
        stride = 1 if li == 1 else 2
        b0 = _block_params(keys[ki], cin, cout,
                           downsample=(stride != 1 or cin != cout))
        ki += 1
        b1 = _block_params(keys[ki], cout, cout, downsample=False)
        ki += 1
        params[f"layer{li}"] = (b0, b1)
        cin = cout
    kfw, kfb = jax.random.split(keys[ki], 2)
    w_fc = jax.random.normal(kfw, (widths[-1], num_classes), jnp.float32) \
        / (widths[-1] ** 0.5)
    b_fc = 0.01 * jax.random.normal(kfb, (num_classes,), jnp.float32)
    params["fc"] = _pack_matmul_params(w_fc, b_fc)   # fc N padded 1000 -> 1024
    return params


# --------------------------------- forward ---------------------------------

def image_fusion_forward(params, stacked_images_nchw, output_layers=(5, 6, 7)):
    """Mirrors ImageFusionModel.forward: returns (features, selected_out)."""
    layer_names = ["conv1", "bn1", "relu", "maxpool", "layer1", "layer2",
                   "layer3", "layer4", "avgpool", "fc"]
    selected_out = {}
    # TODO(synk): hooks on indices 0-3 (conv1/bn1/relu/maxpool) are not exposed
    # individually because conv+bn+relu are fused; default output_layers=[5,6,7]
    # only needs layer2/layer3/layer4.

    x = jnp.transpose(stacked_images_nchw, (0, 2, 3, 1))  # NCHW -> NHWC
    x = x.astype(jnp.bfloat16)
    x = conv_bn(x, params["conv1"], k=7, stride=2, pad=3, relu=True)
    x = maxpool_3x3_s2(x)

    for li in range(1, 5):
        stride = 1 if li == 1 else 2
        x = res_layer(x, params[f"layer{li}"], stride=stride)
        idx = 3 + li  # layer1..layer4 are module indices 4..7
        if idx in output_layers:
            selected_out[layer_names[idx]] = (
                jnp.transpose(x, (0, 3, 1, 2)).astype(jnp.float32))

    pooled = global_avgpool(x)  # (B, 512) f32
    if 8 in output_layers:
        selected_out["avgpool"] = pooled.reshape(pooled.shape[0], -1, 1, 1)

    logits = matmul_bias_act(pooled.astype(jnp.bfloat16),
                             params["fc"]["w"], params["fc"]["b"],
                             relu=False, out_dtype=jnp.float32,
                             n_valid=params["fc"]["n"])  # (B, 1000)
    if 9 in output_layers:
        selected_out["fc"] = logits

    features = jnp.concatenate([logits], axis=-1)  # torch.cat([imgs], dim=-1)
    return features, selected_out


if __name__ == "__main__":
    key = jax.random.PRNGKey(0)
    pkey, xkey = jax.random.split(key)

    n_frames, n_channels = 4, 3
    num_classes = 1000
    params = init_params(pkey, n_frames=n_frames, n_channels=n_channels,
                         num_classes=num_classes)

    B, H, W = 2, 32, 32
    x = jax.random.normal(xkey, (B, n_frames * n_channels, H, W), jnp.float32)

    features, selected = image_fusion_forward(params, x, output_layers=(5, 6, 7))
    features = jax.block_until_ready(features)
    for v in selected.values():
        jax.block_until_ready(v)

    assert features.shape == (B, num_classes), features.shape
    assert selected["layer2"].shape == (B, 128, 4, 4), selected["layer2"].shape
    assert selected["layer3"].shape == (B, 256, 2, 2), selected["layer3"].shape
    assert selected["layer4"].shape == (B, 512, 1, 1), selected["layer4"].shape
    assert bool(jnp.all(jnp.isfinite(features)))

    print("KERNEL_OK")
</pallas_src>

<mosaic_0001>
module attributes {stable_mosaic.version = 11 : i64} {
  func.func @_mm_kernel(%arg0: i32, %arg1: i32, %arg2: i32, %arg3: memref<256x640xbf16, #tpu.memory_space<vmem>>, %arg4: memref<640x128xbf16, #tpu.memory_space<vmem>>, %arg5: memref<1x128xf32, #tpu.memory_space<vmem>>, %arg6: memref<256x128xbf16, #tpu.memory_space<vmem>>, %arg7: memref<256x128xf32, #tpu.memory_space<vmem>>) attributes {dimension_semantics = [#tpu.dimension_semantics<parallel>, #tpu.dimension_semantics<parallel>, #tpu.dimension_semantics<arbitrary>], iteration_bounds = array<i64: 2, 1, 1>, scalar_prefetch = 0 : i64, scratch_operands = 1 : i64, tpu.core_type = #tpu.core_type<tc>, window_params = [{transform_indices = @transform_0, window_bounds = array<i64: 256, 640>}, {transform_indices = @transform_1, window_bounds = array<i64: 640, 128>}, {transform_indices = @transform_2, window_bounds = array<i64: 1, 128>}, {transform_indices = @transform_3, window_bounds = array<i64: 256, 128>}]} {
    %c0_i32 = arith.constant 0 : i32
    %0 = arith.cmpi eq, %arg2, %c0_i32 : i32
    %1 = arith.extui %0 : i1 to i32
    %c0_i32_0 = arith.constant 0 : i32
    %2 = arith.cmpi ne, %1, %c0_i32_0 : i32
    scf.if %2 {
      %cst_10 = arith.constant 0.000000e+00 : f32
      %12 = vector.broadcast %cst_10 : f32 to vector<256x128xf32>
      %c0_11 = arith.constant 0 : index
      %c0_12 = arith.constant 0 : index
      %13 = vector.load %arg7[%c0_11, %c0_12] : memref<256x128xf32, #tpu.memory_space<vmem>>, vector<256x128xf32>
      tpu.vector_store %arg7[%c0_11, %c0_12], %12 {strides = array<i32>} : memref<256x128xf32, #tpu.memory_space<vmem>>, vector<256x128xf32>,
    } else {
    }
    %c0 = arith.constant 0 : index
    %c0_1 = arith.constant 0 : index
    %3 = vector.load %arg7[%c0, %c0_1] : memref<256x128xf32, #tpu.memory_space<vmem>>, vector<256x128xf32>
    %c0_2 = arith.constant 0 : index
    %c0_3 = arith.constant 0 : index
    %4 = vector.load %arg3[%c0_2, %c0_3] : memref<256x640xbf16, #tpu.memory_space<vmem>>, vector<256x640xbf16>
    %c0_4 = arith.constant 0 : index
    %c0_5 = arith.constant 0 : index
    %5 = vector.load %arg4[%c0_4, %c0_5] : memref<640x128xbf16, #tpu.memory_space<vmem>>, vector<640x128xbf16>
    %cst = arith.constant dense<0.000000e+00> : vector<256x128xf32>
    %6 = tpu.matmul %4, %5, %cst {dimension_numbers = #tpu.dot_dimension_numbers<[1], [0], [0], [1], [0, 0, 1, 1], [], []>} : vector<256x640xbf16>, vector<640x128xbf16>, vector<256x128xf32> -> vector<256x128xf32>
    %7 = arith.addf %3, %6 : vector<256x128xf32>
    %c0_6 = arith.constant 0 : index
    %c0_7 = arith.constant 0 : index
    %8 = vector.load %arg7[%c0_6, %c0_7] : memref<256x128xf32, #tpu.memory_space<vmem>>, vector<256x128xf32>
    tpu.vector_store %arg7[%c0_6, %c0_7], %7 {strides = array<i32>} : memref<256x128xf32, #tpu.memory_space<vmem>>, vector<256x128xf32>,
    %c0_i32_8 = arith.constant 0 : i32
    %9 = arith.cmpi eq, %arg2, %c0_i32_8 : i32
    %10 = arith.extui %9 : i1 to i32
    %c0_i32_9 = arith.constant 0 : i32
    %11 = arith.cmpi ne, %10, %c0_i32_9 : i32
    scf.if %11 {
      %c0_10 = arith.constant 0 : index
      %c0_11 = arith.constant 0 : index
      %12 = vector.load %arg7[%c0_10, %c0_11] : memref<256x128xf32, #tpu.memory_space<vmem>>, vector<256x128xf32>
      %c0_12 = arith.constant 0 : index
      %c0_13 = arith.constant 0 : index
      %13 = vector.load %arg5[%c0_12, %c0_13] : memref<1x128xf32, #tpu.memory_space<vmem>>, vector<1x128xf32>
      %14 = vector.broadcast %13 : vector<1x128xf32> to vector<256x128xf32>
      %15 = arith.addf %12, %14 : vector<256x128xf32>
      %cst_14 = arith.constant 0.000000e+00 : f32
      %16 = vector.broadcast %cst_14 : f32 to vector<256x128xf32>
      %17 = arith.maximumf %15, %16 : vector<256x128xf32>
      %18 = arith.truncf %17 : vector<256x128xf32> to vector<256x128xbf16>
      %c0_15 = arith.constant 0 : index
      %c0_16 = arith.constant 0 : index
      %19 = vector.load %arg6[%c0_15, %c0_16] : memref<256x128xbf16, #tpu.memory_space<vmem>>, vector<256x128xbf16>
      tpu.vector_store %arg6[%c0_15, %c0_16], %18 {strides = array<i32>} : memref<256x128xbf16, #tpu.memory_space<vmem>>, vector<256x128xbf16>,
    } else {
    }
    return
  }
  func.func @transform_0(%arg0: i32, %arg1: i32, %arg2: i32) -> (i32, i32) {
    %c0_i32 = arith.constant 0 : i32
    return %arg0, %arg2 : i32, i32
  }
  func.func @transform_1(%arg0: i32, %arg1: i32, %arg2: i32) -> (i32, i32) {
    %c0_i32 = arith.constant 0 : i32
    return %arg2, %arg1 : i32, i32
  }
  func.func @transform_2(%arg0: i32, %arg1: i32, %arg2: i32) -> (i32, i32) {
    %c0_i32 = arith.constant 0 : i32
    %c0_i32_0 = arith.constant 0 : i32
    return %c0_i32, %arg1 : i32, i32
  }
  func.func @transform_3(%arg0: i32, %arg1: i32, %arg2: i32) -> (i32, i32) {
    %c0_i32 = arith.constant 0 : i32
    return %arg0, %arg1 : i32, i32
  }
}

</mosaic_0001>

<bundles_post_ra>
// kernel: tpu_custom_call.1
= control target key start
LH: loop header
LB: loop body
LE: loop exit
PB: predicated region body
PF: predicated region fallthrough
CT: control target
= control target key end

     0   :  { %8 = vsyncpa [#allocation4], 0  ;;  %s3588_s0 = inlined_call_operand.hbm [shape: bf16[512,640], index: 0, kind: input, shape index: {}]   ;;  %s3589_s1 = inlined_call_operand.hbm [shape: bf16[640,128], index: 1, kind: input, shape index: {}]   ;;  %s3590_s2 = inlined_call_operand.vmem [shape: f32[1,128], index: 2, kind: input, shape index: {}]   ;;  %s3591_s3 = inlined_call_operand.hbm [shape: bf16[512,128], index: 3, kind: output, shape index: {}]  }
   0x1   :  { %10 = vsyncpa [#allocation4 + $0x1], 0 }
   0x2   :  { %11 = vsyncpa [#allocation7], 0 }
   0x3   :  { %12 = vsyncpa [#allocation5], 0 }
   0x4   :  { %14 = vsyncpa [#allocation5 + $0x1], 0  ;;  %s3122_s12 = smov 0   ;;  %s3124_s13 = smov 0  }
   0x5   :  { %s3126_s14 = smov 0   ;;  %s3128_s15 = smov 0  }
   0x6   :  { %s3130_s16 = smov 0   ;;  %s3132_s17 = smov 0  }
   0x7 LB: > { %s2103_s18 = sadd.s32 4294967295, %s3091_s17   ;;  %s2104_s19 = sadd.s32 4294967294, %s3091_s17   ;;  %s3091_s17 = sphi %s3132_s17, %s20_s17   ;;  %s3087_s16 = sphi %s3130_s16, %s3614_s16   ;;  %s3083_s15 = sphi %s3128_s15, %s3613_s15   ;;  %s3079_s14 = sphi %s3126_s14, %s3612_s14   ;;  %s3075_s13 = sphi %s3124_s13, %s3611_s13   ;;  %s3071_s12 = sphi %s3122_s12, %s3610_s12  }
   0x8   : > { %p61_p0 = scmp.ne.s32.totalorder %s3075_s13, %s3071_s12  ;;  %p3156_p1 = scmp.eq.s32.totalorder %s2103_s18, 0 }
   0x9   : > { %p3160_p2 = scmp.eq.s32.totalorder %s2103_s18, 1  ;;  %p147_p3 = scmp.eq.s32.totalorder %s2104_s19, 1 }
   0xa   : > { %s3596_s20 = scalar_select %p3156_p1, 1, 0 }
   0xb   : > { %s3597_s21 = scalar_select %p3160_p2, 1, 0 }
   0xc   : > { %p3166_p4 = por %p3156_p1, %p61_p0  ;;  %p2105_p5 = scmp.ge.s32.totalorder %s3091_s17, 1 }
   0xd   : > { %p3171_p6 = por %p147_p3, %p61_p0  ;;  %p154_p7 = scmp.lt.s32.totalorder %s3091_s17, 3 }
   0xe   : > { %s3598_s22 = scalar_select %p3166_p4, 1, 0 }
   0xf   : > { %s3599_s23 = scalar_select %p3171_p6, 1, 0 }
  0x10   : > { %p3176_p8 = pnand %p2105_p5, %p154_p7  ;;  %s3093_s25 = smov [#allocation6]  }
  0x11   : > { %s170_s26 = sshll.u32 %s3093_s25, 4  ;;  %s39_s28 = sadd.s32 1, %s3087_s16  ;;  %s171_s26 = int_to_ptr.vmem [resolvable:$true] %s170_s26 }
  0x12   : > { %s3600_s24 = scalar_select %p3176_p8, 1, 0 }
  0x13   : > { %p2724_p9 = pneg %p3176_p8  ;;  %s2947_s4 = scalar_lea.hbm %s3589_s1, 5120 }
  0x14   : > { %p2948_p12 = scmp.ne.s32.totalorder %s3589_s1, %s2947_s4  ;;  %p2954_p5 = scmp.lt.u32.totalorder %s2947_s4, %s3589_s1 }
  0x15   : > { %p3185_p11 = pnand %p2724_p9, %p3156_p1 }
  0x17   : > { %p2949_p13 = pneg %p3185_p11 }
  0x19   : > { %p2950_p0 = pnand %p2949_p13, %p2948_p12 }
  0x1b   : > { %p2951_p3 = pneg %p2950_p0 }
  0x1d   : > { %p2956_p7 = pnand %p2954_p5, %p2951_p3 }
  0x1f   : > { %2959 = shalt.err (!%p2956_p7)
}
  0x20   : > { %s2960_s9 = scalar_lea.vmem %s171_s26, 5120  ;;  %p2968_p1 = scmp.lt.s32.totalorder %s171_s26, %s171_s26 }
  0x21   : > { %p2961_p9 = scmp.ne.s32.totalorder %s171_s26, %s2960_s9  ;;  %p2969_p4 = scmp.lt.s32.totalorder %s2960_s9, %s2960_s9 }
  0x23   : > { %p2963_p10 = pnand %p2961_p9, %p2949_p13  ;;  %p2970_p8 = por %p2969_p4, %p2968_p1 }
  0x25   : > { %p2964_p6 = pneg %p2963_p10 }
  0x27   : > { %p2971_p2 = pnand %p2970_p8, %p2964_p6 }
  0x29   : > { %2974 = shalt.err (!%p2971_p2)
}
  0x2a   : > { %s3094_s10 = smov 64   ;;  %s3095_s11 = smov 4  }
  0x2b   : > { %2727 = dma.hbm_to_vmem [thread:$0]  (!%p3185_p11), %s3589_s1, 5120, %s171_s26, [#allocation7], %s3094_s10, %s3094_s10, %s3095_s11  }
  0x2c   : > { %p41_p1 = scmp.ge.s32.totalorder %s39_s28, 2  ;;  %s48_s25 = sadd.s32 1, %s3079_s14 }
  0x2d   : > { %p55_p2 = scmp.ne.s32.totalorder %s3079_s14, %s3075_s13  ;;  %p56_p4 = scmp.eq.s32.totalorder %s3091_s17, 0 }
  0x2e   : > { %s3616_s28 = smov (%p41_p1, %s39_s28), 0  ;;  %p3602_p8 = scmp.ne.s32.totalorder %s3597_s21, 0 }
  0x2f   : > { %p57_p6 = por %p56_p4, %p55_p2  ;;  %s43_s30 = ssub.s32 %s3087_s16, %s3616_s28 }
  0x30   : > { %p3214_p10 = por %p3602_p8, %p55_p2  ;;  %p2737_p12 = scmp.lt.s32.totalorder %s3091_s17, 2 }
  0x31   : > { %p46_p13 = scmp.eq.s32.totalorder %s43_s30, 0  ;;  %s190_s27 = sand.u32 1, %s3079_s14  }
  0x32   : > { %s2713_s4 = smul.u32 640, %s190_s27  ;;  %p3226_p11 = pnand %p2737_p12, %p57_p6 }
  0x33   : > { %s3223_s5 = scalar_select %p46_p13, %s3079_s14, %s48_s25  }
  0x34   : > { %s2714_s26 = smul.u32 10240, %s3087_s16  ;;  %s194_s6 = scalar_lea.vmem [#allocation3], %s2713_s4 }
  0x35   : > { %s204_s7 = sshll.u32 %s194_s6, 4  ;;  %s3237_s11 = scalar_lea.sflag [#allocation4], %s190_s27  ;;  %s3235_s7 = int_to_ptr.vmem [resolvable:$true] %s204_s7 }
  0x36   : > { %s3233_s10 = scalar_lea.hbm %s3588_s0, %s2714_s26  ;;  %p2977_p3 = pneg %p3226_p11 }
  0x37   : > { %s2975_s18 = scalar_lea.hbm %s3233_s10, 10240  ;;  %s2980_s30 = scalar_lea.hbm %s3588_s0, 20480 }
  0x38   : > { %p2976_p0 = scmp.ne.s32.totalorder %s3233_s10, %s2975_s18  ;;  %p2981_p9 = scmp.lt.u32.totalorder %s3233_s10, %s3588_s0 }
  0x39   : > { %p2982_p1 = scmp.lt.u32.totalorder %s2980_s30, %s2975_s18  ;;  %p2984_p4 = scmp.lt.u32.totalorder %s2975_s18, %s3233_s10 }
  0x3a   : > { %p2978_p5 = pnand %p2977_p3, %p2976_p0 }
  0x3b   : > { %p2983_p2 = por %p2982_p1, %p2981_p9 }
  0x3c   : > { %p2979_p7 = pneg %p2978_p5 }
  0x3d   : > { %p2985_p6 = por %p2984_p4, %p2983_p2 }
  0x3f   : > { %p2986_p8 = pnand %p2985_p6, %p2979_p7 }
  0x41   : > { %2989 = shalt.err (!%p2986_p8)
}
  0x42   : > { %s2990_s27 = scalar_lea.vmem %s3235_s7, 10240  ;;  %s3096_s6 = smov [#allocation3]  }
  0x43   : > { %p2991_p12 = scmp.ne.s32.totalorder %s3235_s7, %s2990_s27  ;;  %s2995_s9 = sshll.u32 %s3096_s6, 4  ;;  %s2996_s9 = int_to_ptr.vmem [resolvable:$false] %s2995_s9 }
  0x44   : > { %s2997_s21 = scalar_lea.vmem %s2996_s9, 20480  ;;  %p2998_p5 = scmp.lt.s32.totalorder %s3235_s7, %s2996_s9 }
  0x45   : > { %p2993_p13 = pnand %p2991_p12, %p2977_p3  ;;  %p2999_p9 = scmp.lt.s32.totalorder %s2997_s21, %s2990_s27 }
  0x47   : > { %p2994_p0 = pneg %p2993_p13  ;;  %p3000_p1 = por %p2999_p9, %p2998_p5 }
  0x49   : > { %p3001_p2 = pnand %p3000_p1, %p2994_p0 }
  0x4b   : > { %3004 = shalt.err (!%p3001_p2)
}
  0x4c   : > { %s3097_s18 = smov 320   ;;  %s3098_s19 = smov 20  }
  0x4d   : > { %2731 = dma.hbm_to_vmem [thread:$0]  (!%p3226_p11), %s3233_s10, 10240, %s3235_s7, %s3237_s11, %s3097_s18, %s3097_s18, %s3098_s19  }
  0x4e   : > { %p3605_p3 = scmp.ne.s32.totalorder %s3600_s24, 0 }
  0x4f   : > { %s3268_s25 = sand.u32 (!%p3605_p3), 1, %s3075_s13   ;;  %p3606_p7 = scmp.ne.s32.totalorder (!%p3605_p3), %s3598_s22, 0 }
  0x50   : > { %216 = sbr.rel (%p3605_p3) target bundleno = 518 (0x206), region = 32  ;;  %s219_s4 = scalar_lea.sflag (!%p3605_p3), [#allocation4], %s3268_s25 }
  0x51   : > { %s2715_s30 = smul.u32 (!%p3605_p3), 640, %s3268_s25 }
  0x53   : > { %s3272_s26 = scalar_lea.vmem (!%p3605_p3), [#allocation3], %s2715_s30 }
  0x57   : > { %3058 = dma.done.wait (%p3606_p7), %s219_s4, 10240  }
  0x58   : > { %3060 = vsyncadd (%p3606_p7), %s219_s4, 4294957056  ;;  %p3607_p11 = scmp.ne.s32.totalorder %s3596_s20, 0 }
  0x5a   : > { %3062 = dma.done.wait (%p3607_p11), [#allocation7], 5120  }
  0x5b   : > { %3064 = vsyncadd (%p3607_p11), [#allocation7], 4294962176  ;;  %v2795_v0 = vld [vmem:[#allocation6 + $0x40] sm:$0xff]   ;;  %v2797_v2 = vld [vmem:[#allocation6 + $0x48] sm:$0xff]   ;;  %s2114_s24 = sshll.u32 %s3268_s25, 7  ;;  %s2305_s8 = sshll.u32 %s3083_s15, 11 }
  0x5c   : > { %v2796_v1 = vld [vmem:[#allocation6] sm:$0xff]   ;;  %2401 = vmatprep.subr.bf16.mxu0 %v2795_v0  ;;  %2697 = vmatprep.subr.bf16.mxu1 %v2795_v0  ;;  %v2798_v3 = vld [vmem:[#allocation6 + $0x8] sm:$0xff]   ;;  %v2799_v4 = vld [vmem:[#allocation6 + $0x50] sm:$0xff]   ;;  %s3448_s7 = scalar_lea.vmem [#allocation8], %s2114_s24  ;;  %s3536_s6 = scalar_lea.hbm %s3591_s3, %s2305_s8 }
  0x5d   : > { %2402 = vmatpush3.bf16.msra.mxu0 %v2796_v1  ;;  %2705 = vmatpush3.bf16.msra.mxu1 %v2796_v1  ;;  %v2800_v5 = vld [vmem:[#allocation6 + $0x10] sm:$0xff]   ;;  %v2801_v6 = vld [vmem:[#allocation6 + $0x58] sm:$0xff]   ;;  %v2803_v8 = vld [vmem:[#allocation6 + $0x60] sm:$0xff]   ;;  %s1988_s10 = sshll.u32 %s3448_s7, 4  ;;  %s1974_s9 = scalar_lea.sflag [#allocation5], %s3268_s25  ;;  %s3538_s10 = int_to_ptr.vmem [resolvable:$true] %s1988_s10 }
  0x5e   : > { %2403 = vmatprep.subr.bf16.mxu0 %v2797_v2  ;;  %2698 = vmatprep.subr.bf16.mxu1 %v2797_v2  ;;  %v2802_v7 = vld [vmem:[#allocation6 + $0x18] sm:$0xff]   ;;  %v2804_v9 = vld [vmem:[#allocation6 + $0x20] sm:$0xff]   ;;  %v2805_v10 = vld [vmem:[#allocation6 + $0x68] sm:$0xff]   ;;  %s3005_s21 = scalar_lea.vmem %s3538_s10, 2048  ;;  %s3099_s15 = smov [#allocation8]  }
  0x5f   : > { %v2813_v11 = vld [vmem:[%s3272_s26 + $0x4] ss:$20 sps:$4 sm:$0xff]   ;;  %v2806_v13 = vld [vmem:[#allocation6 + $0x28] sm:$0xff]   ;;  %v2807_v14 = vld [vmem:[#allocation6 + $0x70] sm:$0xff]   ;;  %p3006_p4 = scmp.ne.s32.totalorder %s3538_s10, %s3005_s21  ;;  %s3009_s18 = sshll.u32 %s3099_s15, 4  ;;  %s3010_s18 = int_to_ptr.vmem [resolvable:$false] %s3009_s18 }
  0x60   : > { %v2816_v12 = vld [vmem:[%s3272_s26 + $0x1e4] ss:$20 sps:$4 sm:$0xff]   ;;  %1192 = vmatprep.mubr.bf16.mxu0 %v2813_v11  ;;  %v2808_v15 = vld [vmem:[#allocation6 + $0x30] sm:$0xff]   ;;  %v2819_v23 = vld [vmem:[#allocation6 + $0xc8] sm:$0xff]   ;;  %s3011_s19 = scalar_lea.vmem %s3010_s18, 4096  ;;  %p3012_p12 = scmp.lt.s32.totalorder %s3538_s10, %s3010_s18 }
  0x61   : > { %2404 = vmatpush3.bf16.msra.mxu0 %v2798_v3  ;;  %2706 = vmatpush3.bf16.msra.mxu1 %v2798_v3  ;;  %v2809_v16 = vld [vmem:[#allocation6 + $0x78] sm:$0xff]   ;;  %v2817_v18 = vld [vmem:[#allocation6 + $0xc0] sm:$0xff]   ;;  %v2839_v26 = vld [vmem:[#allocation6 + $0x108] sm:$0xff]   ;;  %p3007_p6 = pnand %p3006_p4, %p3214_p10  ;;  %p3013_p13 = scmp.lt.s32.totalorder %s3011_s19, %s3005_s21 }
  0x62   : > { %2405 = vmatprep.subr.bf16.mxu0 %v2799_v4  ;;  %2699 = vmatprep.subr.bf16.mxu1 %v2799_v4  ;;  %v2810_v17 = vld [vmem:[#allocation6 + $0x38] sm:$0xff]   ;;  %v2820_v19 = vld [vmem:[#allocation6 + $0x100] sm:$0xff]   ;;  %v2821_v27 = vld [vmem:[#allocation6 + $0x88] sm:$0xff]  }
  0x63   : > { %1288 = vmatprep.mubr.bf16.mxu1 %v2816_v12  ;;  %v2811_v20 = vld [vmem:[%s3272_s26] ss:$20 sps:$4 sm:$0xff]   ;;  %v2826_v28 = vld [vmem:[%s3272_s26 + $0x28] ss:$20 sps:$4 sm:$0xff]   ;;  %v2836_v37 = vld [vmem:[%s3272_s26 + $0x50] ss:$20 sps:$4 sm:$0xff]   ;;  %p3008_p8 = pneg %p3007_p6  ;;  %p3014_p0 = por %p3013_p13, %p3012_p12 }
  0x64   : > { %v2814_v21 = vld [vmem:[%s3272_s26 + $0x1e0] ss:$20 sps:$4 sm:$0xff]   ;;  %v2827_v30 = vld [vmem:[%s3272_s26 + $0x208] ss:$20 sps:$4 sm:$0xff]   ;;  %v2837_v39 = vld [vmem:[%s3272_s26 + $0x230] ss:$20 sps:$4 sm:$0xff]  }
  0x65   : > { %2406 = vmatpush3.bf16.msra.mxu0 %v2800_v5  ;;  %2707 = vmatpush3.bf16.msra.mxu1 %v2800_v5  ;;  %v2818_v22 = vld [vmem:[#allocation6 + $0x80] sm:$0xff]   ;;  %v2828_v29 = vld [vmem:[#allocation6 + $0xd0] sm:$0xff]   ;;  %v2830_v33 = vld [vmem:[#allocation6 + $0xd8] sm:$0xff]   ;;  %p3015_p5 = pnand %p3014_p0, %p3008_p8 }
  0x66   : > { %2407 = vmatprep.subr.bf16.mxu0 %v2801_v6  ;;  %2700 = vmatprep.subr.bf16.mxu1 %v2801_v6  ;;  %v2822_v24 = vld [vmem:[%s3272_s26 + $0x2c] ss:$20 sps:$4 sm:$0xff]   ;;  %v2829_v31 = vld [vmem:[#allocation6 + $0x90] sm:$0xff]   ;;  %v2831_v35 = vld [vmem:[#allocation6 + $0x98] sm:$0xff]  }
  0x67   : > { %v2824_v25 = vld [vmem:[%s3272_s26 + $0x20c] ss:$20 sps:$4 sm:$0xff]   ;;  %v2832_v32 = vld [vmem:[%s3272_s26 + $0x54] ss:$20 sps:$4 sm:$0xff]   ;;  %v2843_v42 = vld [vmem:[%s3272_s26 + $0x7c] ss:$20 sps:$4 sm:$0xff]  }
  0x68   : > { %v2834_v34 = vld [vmem:[%s3272_s26 + $0x234] ss:$20 sps:$4 sm:$0xff]   ;;  %v2838_v36 = vld [vmem:[#allocation6 + $0xe0] sm:$0xff]   ;;  %v2845_v43 = vld [vmem:[%s3272_s26 + $0x25c] ss:$20 sps:$4 sm:$0xff]  }
  0x69   : > { %2408 = vmatpush3.bf16.msra.mxu0 %v2802_v7  ;;  %2708 = vmatpush3.bf16.msra.mxu1 %v2802_v7  ;;  %v2852_v38 = vld [vmem:[#allocation6 + $0x110] sm:$0xff]   ;;  %v2840_v40 = vld [vmem:[#allocation6 + $0xa0] sm:$0xff]   ;;  %v2841_v41 = vld [vmem:[#allocation6 + $0xe8] sm:$0xff]  }
  0x6a   : > { %2409 = vmatprep.subr.bf16.mxu0 %v2803_v8  ;;  %2701 = vmatprep.subr.bf16.mxu1 %v2803_v8  ;;  %v2842_v44 = vld [vmem:[#allocation6 + $0xa8] sm:$0xff]   ;;  %v2866_v45 = vld [vmem:[#allocation6 + $0x118] sm:$0xff]   ;;  %v2849_v48 = vld [vmem:[#allocation6 + $0xf0] sm:$0xff]  }
  0x6b   : > { %v2847_v46 = vld [vmem:[%s3272_s26 + $0x78] ss:$20 sps:$4 sm:$0xff]   ;;  %v2850_v49 = vld [vmem:[#allocation6 + $0xb0] sm:$0xff]   ;;  %v2873_v52 = vld [vmem:[#allocation6 + $0x120] sm:$0xff]  }
  0x6c   : > { %v2848_v47 = vld [vmem:[%s3272_s26 + $0x258] ss:$20 sps:$4 sm:$0xff]   ;;  %v2856_v55 = vld [vmem:[%s3272_s26 + $0x8] ss:$20 sps:$4 sm:$0xff]   ;;  %v2859_v56 = vld [vmem:[%s3272_s26 + $0xa0] ss:$20 sps:$4 sm:$0xff]  }
  0x6d   : > { %2410 = vmatpush3.bf16.msra.mxu0 %v2804_v9  ;;  %2709 = vmatpush3.bf16.msra.mxu1 %v2804_v9  ;;  %v2851_v50 = vld [vmem:[#allocation6 + $0xf8] sm:$0xff]   ;;  %v2858_v53 = vld [vmem:[%s3272_s26 + $0xc] ss:$20 sps:$4 sm:$0xff]   ;;  %v2862_v59 = vld [vmem:[%s3272_s26 + $0x34] ss:$20 sps:$4 sm:$0xff]  }
  0x6e   : > { %2411 = vmatprep.subr.bf16.mxu0 %v2805_v10  ;;  %2702 = vmatprep.subr.bf16.mxu1 %v2805_v10  ;;  %v2854_v51 = vld [vmem:[%s3272_s26 + $0xa4] ss:$20 sps:$4 sm:$0xff]   ;;  %v2886_v57 = vld [vmem:[#allocation6 + $0x128] sm:$0xff]   ;;  %v2893_v60 = vld [vmem:[#allocation6 + $0x130] sm:$0xff]  }
  0x6f   : > { %v2853_v54 = vld [vmem:[#allocation6 + $0xb8] sm:$0xff]   ;;  %v2860_v58 = vld [vmem:[%s3272_s26 + $0xcc] ss:$20 sps:$4 sm:$0xff]   ;;  %v2865_v62 = vld [vmem:[%s3272_s26 + $0x30] ss:$20 sps:$4 sm:$0xff]  }
  0x70   : > { %v2864_v61 = vld [vmem:[%s3272_s26 + $0xc8] ss:$20 sps:$4 sm:$0xff]   ;;  %v2871_v2 = vld [vmem:[%s3272_s26 + $0xf0] ss:$20 sps:$4 sm:$0xff]   ;;  %v2872_v3 = vld [vmem:[%s3272_s26 + $0x58] ss:$20 sps:$4 sm:$0xff]  }
  0x71   : > { %2412 = vmatpush3.bf16.msra.mxu0 %v2806_v13  ;;  %2710 = vmatpush3.bf16.msra.mxu1 %v2806_v13  ;;  %v2867_v63 = vld [vmem:[%s3272_s26 + $0xf4] ss:$20 sps:$4 sm:$0xff]   ;;  %v2869_v0 = vld [vmem:[%s3272_s26 + $0x5c] ss:$20 sps:$4 sm:$0xff]   ;;  %v2876_v5 = vld [vmem:[%s3272_s26 + $0x84] ss:$20 sps:$4 sm:$0xff]  }
  0x72   : > { %2413 = vmatprep.subr.bf16.mxu0 %v2807_v14  ;;  %2703 = vmatprep.subr.bf16.mxu1 %v2807_v14  ;;  %v2906_v1 = vld [vmem:[#allocation6 + $0x138] sm:$0xff]   ;;  %v2879_v7 = vld [vmem:[%s3272_s26 + $0x80] ss:$20 sps:$4 sm:$0xff]  }
  0x73   : > { %v2874_v4 = vld [vmem:[%s3272_s26 + $0x11c] ss:$20 sps:$4 sm:$0xff]   ;;  %v2878_v6 = vld [vmem:[%s3272_s26 + $0x118] ss:$20 sps:$4 sm:$0xff]   ;;  %v2884_v10 = vld [vmem:[%s3272_s26 + $0x140] ss:$20 sps:$4 sm:$0xff]  }
  0x74   : > { %v2880_v8 = vld [vmem:[%s3272_s26 + $0x144] ss:$20 sps:$4 sm:$0xff]   ;;  %v2882_v9 = vld [vmem:[%s3272_s26 + $0xac] ss:$20 sps:$4 sm:$0xff]   ;;  %v2885_v11 = vld [vmem:[%s3272_s26 + $0xa8] ss:$20 sps:$4 sm:$0xff]  }
  0x75   : > { %2414 = vmatpush3.bf16.msra.mxu0 %v2808_v15  ;;  %2711 = vmatpush3.bf16.msra.mxu1 %v2808_v15  ;;  %v2887_v12 = vld [vmem:[%s3272_s26 + $0x16c] ss:$20 sps:$4 sm:$0xff]   ;;  %v2889_v13 = vld [vmem:[%s3272_s26 + $0xd4] ss:$20 sps:$4 sm:$0xff]   ;;  %v2892_v15 = vld [vmem:[%s3272_s26 + $0xd0] ss:$20 sps:$4 sm:$0xff]  }
  0x76   : > { %2415 = vmatprep.subr.bf16.mxu0 %v2809_v16  ;;  %2704 = vmatprep.subr.bf16.mxu1 %v2809_v16  ;;  %v2891_v14 = vld [vmem:[%s3272_s26 + $0x168] ss:$20 sps:$4 sm:$0xff]  }
  0x77   : > { %v2894_v16 = vld [vmem:[%s3272_s26 + $0x194] ss:$20 sps:$4 sm:$0xff]  }
  0x79   : > { %2416 = vmatpush3.bf16.msra.mxu0 %v2810_v17  ;;  %2712 = vmatpush3.bf16.msra.mxu1 %v2810_v17  ;;  %v2896_v17 = vld [vmem:[%s3272_s26 + $0xfc] ss:$20 sps:$4 sm:$0xff]  }
  0x7a   : > { %2513 = vmatprep.subr.bf16.mxu1 %v2817_v18  ;;  %2649 = vmatprep.subr.bf16.mxu0 %v2820_v19  ;;  %v2898_v18 = vld [vmem:[%s3272_s26 + $0x190] ss:$20 sps:$4 sm:$0xff]  }
  0x7c   : > { %1193 = vmatmul.mubr.bf16.vlgmr.msra.gmra.mrb[0].mxu0 %v2811_v20  ;;  %1289 = vmatmul.mubr.bf16.vlgmr.msra.gmra.mrb[0].mxu1 %v2814_v21  ;;  %v2900_v20 = vld [vmem:[%s3272_s26 + $0x1bc] ss:$20 sps:$4 sm:$0xff]   ;;  %v2902_v21 = vld [vmem:[%s3272_s26 + $0x124] ss:$20 sps:$4 sm:$0xff]  }
  0x7d   : > { %2514 = vmatpush3.bf16.msra.mxu1 %v2818_v22  ;;  %2650 = vmatpush3.bf16.msra.mxu0 %v2820_v19  ;;  %v2899_v19 = vld [vmem:[%s3272_s26 + $0xf8] ss:$20 sps:$4 sm:$0xff]  }
  0x7e   : > { %2515 = vmatprep.subr.bf16.mxu1 %v2819_v23  ;;  %1200 = vmatprep.mubr.bf16.mxu0 %v2822_v24  ;;  %v2904_v22 = vld [vmem:[%s3272_s26 + $0x1b8] ss:$20 sps:$4 sm:$0xff]   ;;  %v2905_v23 = vld [vmem:[%s3272_s26 + $0x120] ss:$20 sps:$4 sm:$0xff]  }
  0x7f   : > { %1296 = vmatprep.mubr.bf16.mxu1 %v2824_v25  ;;  %2651 = vmatprep.subr.bf16.mxu0 %v2839_v26  ;;  %v2907_v24 = vld [vmem:[%s3272_s26 + $0x14c] ss:$20 sps:$4 sm:$0xff]   ;;  %v2909_v25 = vld [vmem:[%s3272_s26 + $0x10] ss:$20 sps:$4 sm:$0xff]  }
  0x81   : > { %2516 = vmatpush3.bf16.msra.mxu1 %v2821_v27  ;;  %2652 = vmatpush3.bf16.msra.mxu0 %v2839_v26  ;;  %v2910_v26 = vld [vmem:[%s3272_s26 + $0x148] ss:$20 sps:$4 sm:$0xff]   ;;  %v2911_v27 = vld [vmem:[%s3272_s26 + $0x38] ss:$20 sps:$4 sm:$0xff]  }
  0x82   : > { %2517 = vmatprep.subr.bf16.mxu1 %v2828_v29  ;;  %2653 = vmatprep.subr.bf16.mxu0 %v2852_v38  ;;  %v2914_v29 = vld [vmem:[%s3272_s26 + $0x60] ss:$20 sps:$4 sm:$0xff]  }
  0x84   : > { %1201 = vmatmul.mubr.bf16.gmra.mrb[4].mxu0 %v2826_v28  ;;  %1297 = vmatmul.mubr.bf16.gmra.mrb[4].mxu1 %v2827_v30  ;;  %v2912_v28 = vld [vmem:[%s3272_s26 + $0x174] ss:$20 sps:$4 sm:$0xff]   ;;  %v2915_v30 = vld [vmem:[%s3272_s26 + $0x170] ss:$20 sps:$4 sm:$0xff]  }
  0x85   : > { %2518 = vmatpush3.bf16.msra.mxu1 %v2829_v31  ;;  %1208 = vmatprep.mubr.bf16.mxu0 %v2832_v32  ;;  %v2916_v31 = vld [vmem:[%s3272_s26 + $0x88] ss:$20 sps:$4 sm:$0xff]  }
  0x86   : > { %2519 = vmatprep.subr.bf16.mxu1 %v2830_v33  ;;  %1304 = vmatprep.mubr.bf16.mxu1 %v2834_v34  ;;  %v2917_v32 = vld [vmem:[%s3272_s26 + $0x19c] ss:$20 sps:$4 sm:$0xff]   ;;  %v2920_v34 = vld [vmem:[%s3272_s26 + $0x198] ss:$20 sps:$4 sm:$0xff]  }
  0x87   : > { %2654 = vmatpush3.bf16.msra.mxu0 %v2852_v38  ;;  %v2919_v33 = vld [vmem:[%s3272_s26 + $0xb0] ss:$20 sps:$4 sm:$0xff]   ;;  %v2925_v38 = vld [vmem:[%s3272_s26 + $0x1c0] ss:$20 sps:$4 sm:$0xff]  }
  0x88   : > { %2655 = vmatprep.subr.bf16.mxu0 %v2866_v45 }
  0x89   : > { %2520 = vmatpush3.bf16.msra.mxu1 %v2831_v35  ;;  %v2921_v35 = vld [vmem:[%s3272_s26 + $0xd8] ss:$20 sps:$4 sm:$0xff]  }
  0x8a   : > { %2521 = vmatprep.subr.bf16.mxu1 %v2838_v36  ;;  %v2922_v36 = vld [vmem:[%s3272_s26 + $0x1c4] ss:$20 sps:$4 sm:$0xff]  }
  0x8b   : > { %2656 = vmatpush3.bf16.msra.mxu0 %v2866_v45  ;;  %v2934_v45 = vld [vmem:[%s3272_s26 + $0x1a0] ss:$20 sps:$4 sm:$0xff]  }
  0x8c   : > { %1209 = vmatmul.mubr.bf16.gmra.mrb[8].mxu0 %v2836_v37  ;;  %1305 = vmatmul.mubr.bf16.gmra.mrb[8].mxu1 %v2837_v39  ;;  %v2924_v37 = vld [vmem:[%s3272_s26 + $0x100] ss:$20 sps:$4 sm:$0xff]   ;;  %v2926_v39 = vld [vmem:[%s3272_s26 + $0x128] ss:$20 sps:$4 sm:$0xff]  }
  0x8d   : > { %2522 = vmatpush3.bf16.msra.mxu1 %v2840_v40  ;;  %1216 = vmatprep.mubr.bf16.mxu0 %v2843_v42  ;;  %v2927_v40 = vld [vmem:[%s3272_s26 + $0x1ec] ss:$20 sps:$4 sm:$0xff]   ;;  %v2930_v42 = vld [vmem:[%s3272_s26 + $0x1e8] ss:$20 sps:$4 sm:$0xff]  }
  0x8e   : > { %2523 = vmatprep.subr.bf16.mxu1 %v2841_v41  ;;  %1312 = vmatprep.mubr.bf16.mxu1 %v2845_v43  ;;  %v2929_v41 = vld [vmem:[%s3272_s26 + $0x150] ss:$20 sps:$4 sm:$0xff]   ;;  %v2931_v43 = vld [vmem:[%s3272_s26 + $0x178] ss:$20 sps:$4 sm:$0xff]  }
  0x8f   : > { %2657 = vmatprep.subr.bf16.mxu0 %v2873_v52 }
  0x90   : > { %2658 = vmatpush3.bf16.msra.mxu0 %v2873_v52  ;;  %v2942_v52 = vld [vmem:[%s3272_s26 + $0x264] ss:$20 sps:$4 sm:$0xff]  }
  0x91   : > { %2524 = vmatpush3.bf16.msra.mxu1 %v2842_v44  ;;  %2659 = vmatprep.subr.bf16.mxu0 %v2886_v57  ;;  %v2932_v44 = vld [vmem:[%s3272_s26 + $0x214] ss:$20 sps:$4 sm:$0xff]  }
  0x92   : > { %2525 = vmatprep.subr.bf16.mxu1 %v2849_v48  ;;  %v2937_v48 = vld [vmem:[%s3272_s26 + $0x23c] ss:$20 sps:$4 sm:$0xff]  }
  0x94   : > { %1217 = vmatmul.mubr.bf16.gmra.mrb[12].mxu0 %v2847_v46  ;;  %1313 = vmatmul.mubr.bf16.gmra.mrb[12].mxu1 %v2848_v47  ;;  %v2935_v46 = vld [vmem:[%s3272_s26 + $0x210] ss:$20 sps:$4 sm:$0xff]   ;;  %v2936_v47 = vld [vmem:[%s3272_s26 + $0x1c8] ss:$20 sps:$4 sm:$0xff]  }
  0x95   : > { %2526 = vmatpush3.bf16.msra.mxu1 %v2850_v49  ;;  %1224 = vmatprep.mubr.bf16.mxu0 %v2854_v51  ;;  %v2939_v49 = vld [vmem:[%s3272_s26 + $0x1f0] ss:$20 sps:$4 sm:$0xff]   ;;  %v2941_v51 = vld [vmem:[%s3272_s26 + $0x218] ss:$20 sps:$4 sm:$0xff]  }
  0x96   : > { %2527 = vmatprep.subr.bf16.mxu1 %v2851_v50  ;;  %1353 = vmatprep.mubr.bf16.mxu1 %v2858_v53  ;;  %v2940_v50 = vld [vmem:[%s3272_s26 + $0x238] ss:$20 sps:$4 sm:$0xff]   ;;  %v2944_v53 = vld [vmem:[%s3272_s26 + $0x240] ss:$20 sps:$4 sm:$0xff]  }
  0x97   : > { %2660 = vmatpush3.bf16.msra.mxu0 %v2886_v57 }
  0x98   : > { %2661 = vmatprep.subr.bf16.mxu0 %v2893_v60 }
  0x99   : > { %2528 = vmatpush3.bf16.msra.mxu1 %v2853_v54  ;;  %v2945_v54 = vld [vmem:[%s3272_s26 + $0x260] ss:$20 sps:$4 sm:$0xff]  }
  0x9b   : > { %2662 = vmatpush3.bf16.msra.mxu0 %v2893_v60 }
  0x9c   : > { %1225 = vmatmul.mubr.bf16.gmra.mrb[16].mxu0 %v2859_v56  ;;  %1354 = vmatmul.mubr.bf16.vlgmr.msra.gmra.mrb[16].mxu1 %v2856_v55  ;;  %v2946_v55 = vld [vmem:[%s3272_s26 + $0x268] ss:$20 sps:$4 sm:$0xff]  }
  0x9d   : > { %1232 = vmatprep.mubr.bf16.mxu0 %v2860_v58  ;;  %1361 = vmatprep.mubr.bf16.mxu1 %v2862_v59 }
  0x9e   : > { %2663 = vmatprep.subr.bf16.mxu0 %v2906_v1 }
  0x9f   : > { %2664 = vmatpush3.bf16.msra.mxu0 %v2906_v1 }
  0xa4   : > { %1233 = vmatmul.mubr.bf16.gmra.mrb[20].mxu0 %v2864_v61  ;;  %1362 = vmatmul.mubr.bf16.gmra.mrb[20].mxu1 %v2865_v62 }
  0xa5   : > { %1240 = vmatprep.mubr.bf16.mxu0 %v2867_v63  ;;  %1369 = vmatprep.mubr.bf16.mxu1 %v2869_v0 }
  0xac   : > { %1241 = vmatmul.mubr.bf16.gmra.mrb[24].mxu0 %v2871_v2  ;;  %1370 = vmatmul.mubr.bf16.gmra.mrb[24].mxu1 %v2872_v3 }
  0xad   : > { %1248 = vmatprep.mubr.bf16.mxu0 %v2874_v4  ;;  %1377 = vmatprep.mubr.bf16.mxu1 %v2876_v5 }
  0xb4   : > { %1249 = vmatmul.mubr.bf16.gmra.mrb[28].mxu0 %v2878_v6  ;;  %1378 = vmatmul.mubr.bf16.gmra.mrb[28].mxu1 %v2879_v7 }
  0xb5   : > { %1256 = vmatprep.mubr.bf16.mxu0 %v2880_v8  ;;  %1385 = vmatprep.mubr.bf16.mxu1 %v2882_v9 }
  0xbc   : > { %1257 = vmatmul.mubr.bf16.gmra.mrb[32].mxu0 %v2884_v10  ;;  %1386 = vmatmul.mubr.bf16.gmra.mrb[32].mxu1 %v2885_v11 }
  0xbd   : > { %1264 = vmatprep.mubr.bf16.mxu0 %v2887_v12  ;;  %1393 = vmatprep.mubr.bf16.mxu1 %v2889_v13 }
  0xc4   : > { %1265 = vmatmul.mubr.bf16.gmra.mrb[36].mxu0 %v2891_v14  ;;  %1394 = vmatmul.mubr.bf16.gmra.mrb[36].mxu1 %v2892_v15 }
  0xc5   : > { %1272 = vmatprep.mubr.bf16.mxu0 %v2894_v16  ;;  %1401 = vmatprep.mubr.bf16.mxu1 %v2896_v17 }
  0xcc   : > { %1273 = vmatmul.mubr.bf16.gmra.mrb[40].mxu0 %v2898_v18  ;;  %1402 = vmatmul.mubr.bf16.gmra.mrb[40].mxu1 %v2899_v19 }
  0xcd   : > { %1280 = vmatprep.mubr.bf16.mxu0 %v2900_v20  ;;  %1409 = vmatprep.mubr.bf16.mxu1 %v2902_v21 }
  0xd4   : > { %1281 = vmatmul.mubr.bf16.gmra.mrb[44].mxu0 %v2904_v22  ;;  %1410 = vmatmul.mubr.bf16.gmra.mrb[44].mxu1 %v2905_v23 }
  0xd5   : > { %1417 = vmatprep.mubr.bf16.mxu1 %v2907_v24  ;;  %2665 = vmatprep.mubr.bf16.mxu0 %v2909_v25 }
  0xdc   : > { %1418 = vmatmul.mubr.bf16.gmra.mrb[48].mxu1 %v2910_v26  ;;  %2666 = vmatmul.mubr.bf16.vlgmr.msra.gmra.mrb[48].mxu0 %v2911_v27 }
  0xdd   : > { %1425 = vmatprep.mubr.bf16.mxu1 %v2912_v28  ;;  %2669 = vmatprep.mubr.bf16.mxu0 %v2914_v29 }
  0xe4   : > { %1426 = vmatmul.mubr.bf16.gmra.mrb[52].mxu1 %v2915_v30  ;;  %2670 = vmatmul.mubr.bf16.gmra.mrb[52].mxu0 %v2916_v31 }
  0xe5   : > { %1433 = vmatprep.mubr.bf16.mxu1 %v2917_v32  ;;  %2673 = vmatprep.mubr.bf16.mxu0 %v2919_v33 }
  0xec   : > { %1434 = vmatmul.mubr.bf16.gmra.mrb[56].mxu1 %v2920_v34  ;;  %2674 = vmatmul.mubr.bf16.gmra.mrb[56].mxu0 %v2921_v35 }
  0xed   : > { %1441 = vmatprep.mubr.bf16.mxu1 %v2922_v36  ;;  %2677 = vmatprep.mubr.bf16.mxu0 %v2924_v37 }
  0xf4   : > { %1442 = vmatmul.mubr.bf16.gmra.mrb[60].mxu1 %v2925_v38  ;;  %2678 = vmatmul.mubr.bf16.gmra.mrb[60].mxu0 %v2926_v39 }
  0xf5   : > { %1449 = vmatprep.mubr.bf16.mxu1 %v2927_v40  ;;  %2681 = vmatprep.mubr.bf16.mxu0 %v2929_v41 }
  0xfc   : > { %1450 = vmatmul.mubr.bf16.gmra.mrb[64].mxu1 %v2930_v42  ;;  %2682 = vmatmul.mubr.bf16.gmra.mrb[64].mxu0 %v2931_v43 }
  0xfd   : > { %1457 = vmatprep.mubr.bf16.mxu1 %v2932_v44  ;;  %2685 = vmatprep.mubr.bf16.mxu0 %v2934_v45 }
 0x104   : > { %1458 = vmatmul.mubr.bf16.gmra.mrb[68].mxu1 %v2935_v46  ;;  %2686 = vmatmul.mubr.bf16.gmra.mrb[68].mxu0 %v2936_v47 }
 0x105   : > { %1465 = vmatprep.mubr.bf16.mxu1 %v2937_v48  ;;  %2689 = vmatprep.mubr.bf16.mxu0 %v2939_v49 }
 0x10c   : > { %1466 = vmatmul.mubr.bf16.gmra.mrb[72].mxu1 %v2940_v50  ;;  %2690 = vmatmul.mubr.bf16.gmra.mrb[72].mxu0 %v2941_v51 }
 0x10d   : > { %1473 = vmatprep.mubr.bf16.mxu1 %v2942_v52  ;;  %2693 = vmatprep.mubr.bf16.mxu0 %v2944_v53 }
 0x114   : > { %1474 = vmatmul.mubr.bf16.gmra.mrb[76].mxu1 %v2945_v54  ;;  %2694 = vmatmul.mubr.bf16.gmra.mrb[76].mxu0 %v2946_v55 }
 0x14f   : > { %v2489_v56 = vpop.f32.mrb[0].mxu1  ;;  %v2417_v57 = vpop.f32.mrb[0].mxu0 }
 0x150   : > { %v2490_v58 = vpop.f32.mrb[1].mxu1  ;;  %v2418_v59 = vpop.f32.mrb[1].mxu0 }
 0x151   : > { %v3362_v60 = vadd.f32 %v2490_v58, %v2489_v56  ;;  %v2492_v61 = vpop.f32.mrb[2].mxu1  ;;  %v2419_v62 = vadd.f32 %v2418_v59, %v2417_v57  ;;  %v2420_v63 = vpop.f32.mrb[2].mxu0 }
 0x152   : > { %v2493_v0 = vpop.f32.mrb[3].mxu1  ;;  %v2421_v1 = vpop.f32.mrb[3].mxu0 }
 0x153   : > { %v3364_v2 = vadd.f32 %v2493_v0, %v2492_v61  ;;  %v2422_v3 = vadd.f32 %v2421_v1, %v2420_v63 }
 0x157   : > { %v2495_v4 = vpop.f32.mrb[4].mxu1  ;;  %v2423_v5 = vpop.f32.mrb[4].mxu0 }
 0x158   : > { %v2496_v6 = vpop.f32.mrb[5].mxu1  ;;  %v2424_v7 = vpop.f32.mrb[5].mxu0 }
 0x159   : > { %v3366_v8 = vadd.f32 %v2496_v6, %v2495_v4  ;;  %v2498_v9 = vpop.f32.mrb[6].mxu1  ;;  %v2425_v10 = vadd.f32 %v2424_v7, %v2423_v5  ;;  %v2426_v11 = vpop.f32.mrb[6].mxu0 }
 0x15a   : > { %v2499_v12 = vpop.f32.mrb[7].mxu1  ;;  %v2427_v13 = vpop.f32.mrb[7].mxu0 }
 0x15b   : > { %v3368_v14 = vadd.f32 %v2499_v12, %v2498_v9  ;;  %v2428_v15 = vadd.f32 %v2427_v13, %v2426_v11 }
 0x15f   : > { %v2501_v16 = vpop.f32.mrb[8].mxu1  ;;  %v2429_v17 = vpop.f32.mrb[8].mxu0 }
 0x160   : > { %v2502_v18 = vpop.f32.mrb[9].mxu1  ;;  %v2430_v19 = vpop.f32.mrb[9].mxu0 }
 0x161   : > { %v3370_v20 = vadd.f32 %v2502_v18, %v2501_v16  ;;  %v2504_v21 = vpop.f32.mrb[10].mxu1  ;;  %v2431_v22 = vadd.f32 %v2430_v19, %v2429_v17  ;;  %v2432_v23 = vpop.f32.mrb[10].mxu0 }
 0x162   : > { %v2505_v24 = vpop.f32.mrb[11].mxu1  ;;  %v2433_v25 = vpop.f32.mrb[11].mxu0 }
 0x163   : > { %v3372_v26 = vadd.f32 %v2505_v24, %v2504_v21  ;;  %v2434_v27 = vadd.f32 %v2433_v25, %v2432_v23 }
 0x167   : > { %v2507_v28 = vpop.f32.mrb[12].mxu1  ;;  %v2435_v29 = vpop.f32.mrb[12].mxu0 }
 0x168   : > { %v2508_v30 = vpop.f32.mrb[13].mxu1  ;;  %v2436_v31 = vpop.f32.mrb[13].mxu0 }
 0x169   : > { %v3374_v32 = vadd.f32 %v2508_v30, %v2507_v28  ;;  %v2510_v33 = vpop.f32.mrb[14].mxu1  ;;  %v2437_v34 = vadd.f32 %v2436_v31, %v2435_v29  ;;  %v2438_v35 = vpop.f32.mrb[14].mxu0 }
 0x16a   : > { %v2511_v36 = vpop.f32.mrb[15].mxu1  ;;  %v2439_v37 = vpop.f32.mrb[15].mxu0 }
 0x16b   : > { %v3376_v38 = vadd.f32 %v2511_v36, %v2510_v33  ;;  %v2440_v39 = vadd.f32 %v2439_v37, %v2438_v35 }
 0x16f   : > { %v2529_v40 = vpop.f32.mrb[16].mxu1  ;;  %v2441_v41 = vpop.f32.mrb[16].mxu0 }
 0x170   : > { %v2530_v42 = vpop.f32.mrb[17].mxu1  ;;  %v2442_v43 = vpop.f32.mrb[17].mxu0 }
 0x171   : > { %v2531_v44 = vadd.f32 %v2530_v42, %v2529_v40  ;;  %v2532_v45 = vpop.f32.mrb[18].mxu1  ;;  %v2443_v46 = vadd.f32 %v2442_v43, %v2441_v41  ;;  %v2444_v47 = vpop.f32.mrb[18].mxu0 }
 0x172   : > { %v2533_v48 = vpop.f32.mrb[19].mxu1  ;;  %v2445_v49 = vpop.f32.mrb[19].mxu0 }
 0x173   : > { %v2534_v50 = vadd.f32 %v2533_v48, %v2532_v45  ;;  %v2446_v51 = vadd.f32 %v2445_v49, %v2444_v47  ;;  %v3378_v52 = vadd.f32 %v2531_v44, %v2419_v62 }
 0x175   : > { %v3380_v53 = vadd.f32 %v2534_v50, %v2422_v3 }
 0x177   : > { %v2535_v54 = vpop.f32.mrb[20].mxu1  ;;  %v2447_v55 = vpop.f32.mrb[20].mxu0 }
 0x178   : > { %v2536_v56 = vpop.f32.mrb[21].mxu1  ;;  %v2448_v57 = vpop.f32.mrb[21].mxu0 }
 0x179   : > { %v2537_v58 = vadd.f32 %v2536_v56, %v2535_v54  ;;  %v2538_v59 = vpop.f32.mrb[22].mxu1  ;;  %v2449_v61 = vadd.f32 %v2448_v57, %v2447_v55  ;;  %v2450_v63 = vpop.f32.mrb[22].mxu0 }
 0x17a   : > { %v2539_v0 = vpop.f32.mrb[23].mxu1  ;;  %v2451_v1 = vpop.f32.mrb[23].mxu0 }
 0x17b   : > { %v2540_v4 = vadd.f32 %v2539_v0, %v2538_v59  ;;  %v2452_v5 = vadd.f32 %v2451_v1, %v2450_v63  ;;  %v3382_v6 = vadd.f32 %v2537_v58, %v2425_v10 }
 0x17d   : > { %v3384_v7 = vadd.f32 %v2540_v4, %v2428_v15 }
 0x17f   : > { %v2541_v62 = vpop.f32.mrb[24].mxu1  ;;  %v2453_v9 = vpop.f32.mrb[24].mxu0 }
 0x180   : > { %v2542_v3 = vpop.f32.mrb[25].mxu1  ;;  %v2454_v11 = vpop.f32.mrb[25].mxu0 }
 0x181   : > { %v2543_v12 = vadd.f32 %v2542_v3, %v2541_v62  ;;  %v2544_v13 = vpop.f32.mrb[26].mxu1  ;;  %v2455_v16 = vadd.f32 %v2454_v11, %v2453_v9  ;;  %v2456_v17 = vpop.f32.mrb[26].mxu0 }
 0x182   : > { %v2545_v18 = vpop.f32.mrb[27].mxu1  ;;  %v2457_v19 = vpop.f32.mrb[27].mxu0 }
 0x183   : > { %v2546_v21 = vadd.f32 %v2545_v18, %v2544_v13  ;;  %v2458_v23 = vadd.f32 %v2457_v19, %v2456_v17  ;;  %v3386_v24 = vadd.f32 %v2543_v12, %v2431_v22 }
 0x185   : > { %v3388_v25 = vadd.f32 %v2546_v21, %v2434_v27 }
 0x187   : > { %v2547_v10 = vpop.f32.mrb[28].mxu1  ;;  %v2459_v28 = vpop.f32.mrb[28].mxu0 }
 0x188   : > { %v2548_v15 = vpop.f32.mrb[29].mxu1  ;;  %v2460_v29 = vpop.f32.mrb[29].mxu0 }
 0x189   : > { %v2549_v30 = vadd.f32 %v2548_v15, %v2547_v10  ;;  %v2550_v31 = vpop.f32.mrb[30].mxu1  ;;  %v2461_v33 = vadd.f32 %v2460_v29, %v2459_v28  ;;  %v2462_v35 = vpop.f32.mrb[30].mxu0 }
 0x18a   : > { %v2551_v36 = vpop.f32.mrb[31].mxu1  ;;  %v2463_v37 = vpop.f32.mrb[31].mxu0 }
 0x18b   : > { %v2552_v40 = vadd.f32 %v2551_v36, %v2550_v31  ;;  %v2464_v41 = vadd.f32 %v2463_v37, %v2462_v35  ;;  %v3390_v42 = vadd.f32 %v2549_v30, %v2437_v34 }
 0x18d   : > { %v3392_v43 = vadd.f32 %v2552_v40, %v2440_v39 }
 0x18f   : > { %v2553_v22 = vpop.f32.mrb[32].mxu1  ;;  %v2465_v44 = vpop.f32.mrb[32].mxu0 }
 0x190   : > { %v2554_v27 = vpop.f32.mrb[33].mxu1  ;;  %v2466_v45 = vpop.f32.mrb[33].mxu0 }
 0x191   : > { %v2555_v47 = vadd.f32 %v2554_v27, %v2553_v22  ;;  %v2556_v48 = vpop.f32.mrb[34].mxu1  ;;  %v3394_v49 = vadd.f32 %v2466_v45, %v2465_v44  ;;  %v2468_v50 = vpop.f32.mrb[34].mxu0 }
 0x192   : > { %v2557_v54 = vpop.f32.mrb[35].mxu1  ;;  %v2469_v55 = vpop.f32.mrb[35].mxu0 }
 0x193   : > { %v2558_v56 = vadd.f32 %v2557_v54, %v2556_v48  ;;  %v3396_v57 = vadd.f32 %v2469_v55, %v2468_v50  ;;  %v3398_v58 = vadd.f32 %v2555_v47, %v2443_v46 }
 0x195   : > { %v3400_v34 = vadd.f32 %v2558_v56, %v2446_v51 }
 0x197   : > { %v2559_v39 = vpop.f32.mrb[36].mxu1  ;;  %v2471_v59 = vpop.f32.mrb[36].mxu0 }
 0x198   : > { %v2560_v63 = vpop.f32.mrb[37].mxu1  ;;  %v2472_v0 = vpop.f32.mrb[37].mxu0 }
 0x199   : > { %v2561_v1 = vadd.f32 %v2560_v63, %v2559_v39  ;;  %v2562_v4 = vpop.f32.mrb[38].mxu1  ;;  %v3402_v62 = vadd.f32 %v2472_v0, %v2471_v59  ;;  %v2474_v9 = vpop.f32.mrb[38].mxu0  ;;  %v3429_v63 = vld [vmem:[%s3590_s2] ss:$0 sm:$0xff] }
 0x19a   : > { %v2563_v3 = vpop.f32.mrb[39].mxu1  ;;  %v2475_v11 = vpop.f32.mrb[39].mxu0 }
 0x19b   : > { %v2564_v12 = vadd.f32 %v2563_v3, %v2562_v4  ;;  %v3404_v13 = vadd.f32 %v2475_v11, %v2474_v9  ;;  %v3406_v17 = vadd.f32 %v2561_v1, %v2449_v61 }
 0x19d   : > { %v3408_v46 = vadd.f32 %v2564_v12, %v2452_v5 }
 0x19f   : > { %v2565_v51 = vpop.f32.mrb[40].mxu1  ;;  %v2477_v18 = vpop.f32.mrb[40].mxu0 }
 0x1a0   : > { %v2566_v19 = vpop.f32.mrb[41].mxu1  ;;  %v2478_v21 = vpop.f32.mrb[41].mxu0 }
 0x1a1   : > { %v2567_v10 = vadd.f32 %v2566_v19, %v2565_v51  ;;  %v2568_v28 = vpop.f32.mrb[42].mxu1  ;;  %v3410_v15 = vadd.f32 %v2478_v21, %v2477_v18  ;;  %v2480_v29 = vpop.f32.mrb[42].mxu0 }
 0x1a2   : > { %v2569_v30 = vpop.f32.mrb[43].mxu1  ;;  %v2481_v31 = vpop.f32.mrb[43].mxu0 }
 0x1a3   : > { %v2570_v35 = vadd.f32 %v2569_v30, %v2568_v28  ;;  %v3412_v36 = vadd.f32 %v2481_v31, %v2480_v29  ;;  %v3414_v37 = vadd.f32 %v2567_v10, %v2455_v16 }
 0x1a5   : > { %v3416_v61 = vadd.f32 %v2570_v35, %v2458_v23 }
 0x1a7   : > { %v2571_v5 = vpop.f32.mrb[44].mxu1  ;;  %v2483_v40 = vpop.f32.mrb[44].mxu0 }
 0x1a8   : > { %v2572_v22 = vpop.f32.mrb[45].mxu1  ;;  %v2484_v44 = vpop.f32.mrb[45].mxu0 }
 0x1a9   : > { %v2573_v27 = vadd.f32 %v2572_v22, %v2571_v5  ;;  %v2574_v45 = vpop.f32.mrb[46].mxu1  ;;  %v3418_v47 = vadd.f32 %v2484_v44, %v2483_v40  ;;  %v2486_v48 = vpop.f32.mrb[46].mxu0 }
 0x1aa   : > { %v2575_v50 = vpop.f32.mrb[47].mxu1  ;;  %v2487_v54 = vpop.f32.mrb[47].mxu0 }
 0x1ab   : > { %v2576_v55 = vadd.f32 %v2575_v50, %v2574_v45  ;;  %v3420_v56 = vadd.f32 %v2487_v54, %v2486_v48  ;;  %v3422_v39 = vadd.f32 %v2573_v27, %v2461_v33 }
 0x1ad   : > { %v3424_v16 = vadd.f32 %v2576_v55, %v2464_v41 }
 0x1af   : > { %v2577_v23 = vpop.f32.mrb[48].mxu1  ;;  %v2667_v59 = vpop.f32.mrb[48].mxu0 }
 0x1b0   : > { %v1525_v0 = vadd.f32 %v2667_v59, %v3382_v6  ;;  %v2578_v1 = vpop.f32.mrb[49].mxu1  ;;  %v1516_v4 = vpop.f32.mrb[49].mxu0 }
 0x1b1   : > { %v2579_v9 = vadd.f32 %v2578_v1, %v2577_v23  ;;  %v1517_v3 = vadd.f32 %v1516_v4, %v3378_v52  ;;  %v2580_v11 = vpop.f32.mrb[50].mxu1  ;;  %v2668_v33 = vpop.f32.mrb[50].mxu0 }
 0x1b2   : > { %v1751_v41 = vadd.f32 %v3429_v63, %v1525_v0  ;;  %v1528_v12 = vadd.f32 %v2668_v33, %v3384_v7  ;;  %v2581_v51 = vpop.f32.mrb[51].mxu1  ;;  %v1519_v18 = vpop.f32.mrb[51].mxu0 }
 0x1b3   : > { %v1749_v19 = vadd.f32 %v3429_v63, %v1517_v3  ;;  %v2582_v21 = vadd.f32 %v2581_v51, %v2580_v11  ;;  %v1520_v10 = vadd.f32 %v1519_v18, %v3380_v53  ;;  %v3438_v6 = vadd.f32 %v2579_v9, %v3394_v49 }
 0x1b4   : > { %v1752_v28 = vadd.f32 %v3429_v63, %v1528_v12  ;;  %v1783_v30 = vmax.f32 %v1751_v41, 0.0 }
 0x1b5   : > { %v1750_v52 = vadd.f32 %v3429_v63, %v1520_v10  ;;  %v3444_v29 = vadd.f32 %v2582_v21, %v3396_v57  ;;  %v1781_v31 = vmax.f32 %v1749_v19, 0.0 }
 0x1b6   : > { %v1784_v7 = vmax.f32 %v1752_v28, 0.0 }
 0x1b7   : > { %v1782_v35 = vmax.f32 %v1750_v52, 0.0  ;;  %v2583_v5 = vpop.f32.mrb[52].mxu1  ;;  %v2671_v40 = vpop.f32.mrb[52].mxu0 }
 0x1b8   : > { %v2314_v22 = vpack.c.bf16 %v1784_v7, %v1783_v30  ;;  %v1541_v53 = vadd.f32 %v2671_v40, %v3390_v42  ;;  %v2584_v44 = vpop.f32.mrb[53].mxu1  ;;  %v1532_v49 = vpop.f32.mrb[53].mxu0 }
 0x1b9   : > { %v2309_v27 = vpack.c.bf16 %v1782_v35, %v1781_v31  ;;  %v2585_v45 = vadd.f32 %v2584_v44, %v2583_v5  ;;  %v1533_v48 = vadd.f32 %v1532_v49, %v3386_v24  ;;  %v2586_v50 = vpop.f32.mrb[54].mxu1  ;;  %v2672_v54 = vpop.f32.mrb[54].mxu0 }
 0x1ba   : > { %2386 = vst [vmem:[%s3448_s7 + $0x8] sm:$0xff] %v2314_v22   ;;  %v1755_v57 = vadd.f32 %v3429_v63, %v1541_v53  ;;  %v1544_v55 = vadd.f32 %v2672_v54, %v3392_v43  ;;  %v2587_v23 = vpop.f32.mrb[55].mxu1  ;;  %v1535_v59 = vpop.f32.mrb[55].mxu0 }
 0x1bb   : > { %2310 = vst [vmem:[%s3448_s7] sm:$0xff] %v2309_v27   ;;  %v1753_v42 = vadd.f32 %v3429_v63, %v1533_v48  ;;  %v2588_v0 = vadd.f32 %v2587_v23, %v2586_v50  ;;  %v1536_v1 = vadd.f32 %v1535_v59, %v3388_v25  ;;  %v3457_v24 = vadd.f32 %v2585_v45, %v3402_v62 }
 0x1bc   : > { %v1756_v4 = vadd.f32 %v3429_v63, %v1544_v55  ;;  %v1787_v43 = vmax.f32 %v1755_v57, 0.0 }
 0x1bd   : > { %v1754_v9 = vadd.f32 %v3429_v63, %v1536_v1  ;;  %v3462_v3 = vadd.f32 %v2588_v0, %v3404_v13  ;;  %v1785_v33 = vmax.f32 %v1753_v42, 0.0 }
 0x1be   : > { %v1788_v11 = vmax.f32 %v1756_v4, 0.0 }
 0x1bf   : > { %v1786_v41 = vmax.f32 %v1754_v9, 0.0  ;;  %v2589_v12 = vpop.f32.mrb[56].mxu1  ;;  %v2675_v51 = vpop.f32.mrb[56].mxu0 }
 0x1c0   : > { %v2324_v18 = vpack.c.bf16 %v1788_v11, %v1787_v43  ;;  %v1557_v25 = vadd.f32 %v2675_v51, %v3406_v17  ;;  %v2590_v62 = vpop.f32.mrb[57].mxu1  ;;  %v1548_v19 = vpop.f32.mrb[57].mxu0 }
 0x1c1   : > { %v2319_v21 = vpack.c.bf16 %v1786_v41, %v1785_v33  ;;  %v2591_v10 = vadd.f32 %v2590_v62, %v2589_v12  ;;  %v1549_v28 = vadd.f32 %v1548_v19, %v3398_v58  ;;  %v2592_v52 = vpop.f32.mrb[58].mxu1  ;;  %v2676_v13 = vpop.f32.mrb[58].mxu0 }
 0x1c2   : > { %2388 = vst [vmem:[%s3448_s7 + $0x18] sm:$0xff] %v2324_v18   ;;  %v1759_v30 = vadd.f32 %v3429_v63, %v1557_v25  ;;  %v1560_v7 = vadd.f32 %v2676_v13, %v3408_v46  ;;  %v2593_v31 = vpop.f32.mrb[59].mxu1  ;;  %v1551_v35 = vpop.f32.mrb[59].mxu0 }
 0x1c3   : > { %2387 = vst [vmem:[%s3448_s7 + $0x10] sm:$0xff] %v2319_v21   ;;  %v1757_v5 = vadd.f32 %v3429_v63, %v1549_v28  ;;  %v2594_v40 = vadd.f32 %v2593_v31, %v2592_v52  ;;  %v1552_v17 = vadd.f32 %v1551_v35, %v3400_v34  ;;  %v3473_v22 = vadd.f32 %v2591_v10, %v3410_v15 }
 0x1c4   : > { %v1760_v58 = vadd.f32 %v3429_v63, %v1560_v7  ;;  %v1791_v46 = vmax.f32 %v1759_v30, 0.0 }
 0x1c5   : > { %v1758_v53 = vadd.f32 %v3429_v63, %v1552_v17  ;;  %v3478_v44 = vadd.f32 %v2594_v40, %v3412_v36  ;;  %v1789_v27 = vmax.f32 %v1757_v5, 0.0 }
 0x1c6   : > { %v1792_v49 = vmax.f32 %v1760_v58, 0.0 }
 0x1c7   : > { %v1790_v45 = vmax.f32 %v1758_v53, 0.0  ;;  %v2595_v48 = vpop.f32.mrb[60].mxu1  ;;  %v2679_v50 = vpop.f32.mrb[60].mxu0 }
 0x1c8   : > { %v2334_v54 = vpack.c.bf16 %v1792_v49, %v1791_v46  ;;  %v1573_v34 = vadd.f32 %v2679_v50, %v3422_v39  ;;  %v2596_v15 = vpop.f32.mrb[61].mxu1  ;;  %v1564_v57 = vpop.f32.mrb[61].mxu0 }
 0x1c9   : > { %v2329_v55 = vpack.c.bf16 %v1790_v45, %v1789_v27  ;;  %v2597_v23 = vadd.f32 %v2596_v15, %v2595_v48  ;;  %v1565_v59 = vadd.f32 %v1564_v57, %v3414_v37  ;;  %v2598_v42 = vpop.f32.mrb[62].mxu1  ;;  %v2680_v36 = vpop.f32.mrb[62].mxu0 }
 0x1ca   : > { %2390 = vst [vmem:[%s3448_s7 + $0x28] sm:$0xff] %v2334_v54   ;;  %v1763_v0 = vadd.f32 %v3429_v63, %v1573_v34  ;;  %v1576_v1 = vadd.f32 %v2680_v36, %v3424_v16  ;;  %v2599_v4 = vpop.f32.mrb[63].mxu1  ;;  %v1567_v9 = vpop.f32.mrb[63].mxu0 }
 0x1cb   : > { %2389 = vst [vmem:[%s3448_s7 + $0x20] sm:$0xff] %v2329_v55   ;;  %v1761_v43 = vadd.f32 %v3429_v63, %v1565_v59  ;;  %v2600_v11 = vadd.f32 %v2599_v4, %v2598_v42  ;;  %v1568_v39 = vadd.f32 %v1567_v9, %v3416_v61  ;;  %v1444_v33 = vadd.f32 %v2597_v23, %v3418_v47 }
 0x1cc   : > { %v1764_v41 = vadd.f32 %v3429_v63, %v1576_v1  ;;  %v1795_v51 = vmax.f32 %v1763_v0, 0.0 }
 0x1cd   : > { %v1762_v37 = vadd.f32 %v3429_v63, %v1568_v39  ;;  %v1447_v12 = vadd.f32 %v2600_v11, %v3420_v56  ;;  %v1793_v16 = vmax.f32 %v1761_v43, 0.0 }
 0x1ce   : > { %v1796_v18 = vmax.f32 %v1764_v41, 0.0 }
 0x1cf   : > { %v1794_v25 = vmax.f32 %v1762_v37, 0.0  ;;  %v2601_v62 = vpop.f32.mrb[64].mxu1  ;;  %v2683_v19 = vpop.f32.mrb[64].mxu0 }
 0x1d0   : > { %v2344_v21 = vpack.c.bf16 %v1796_v18, %v1795_v51  ;;  %v1589_v10 = vadd.f32 %v2683_v19, %v3457_v24  ;;  %v2602_v61 = vpop.f32.mrb[65].mxu1  ;;  %v1580_v28 = vpop.f32.mrb[65].mxu0 }
 0x1d1   : > { %v2339_v47 = vpack.c.bf16 %v1794_v25, %v1793_v16  ;;  %v2603_v52 = vadd.f32 %v2602_v61, %v2601_v62  ;;  %v1581_v13 = vadd.f32 %v1580_v28, %v3438_v6  ;;  %v2604_v30 = vpop.f32.mrb[66].mxu1  ;;  %v2684_v7 = vpop.f32.mrb[66].mxu0 }
 0x1d2   : > { %2392 = vst [vmem:[%s3448_s7 + $0x38] sm:$0xff] %v2344_v21   ;;  %v1767_v56 = vadd.f32 %v3429_v63, %v1589_v10  ;;  %v1592_v31 = vadd.f32 %v2684_v7, %v3462_v3  ;;  %v2605_v35 = vpop.f32.mrb[67].mxu1  ;;  %v1583_v5 = vpop.f32.mrb[67].mxu0 }
 0x1d3   : > { %2391 = vst [vmem:[%s3448_s7 + $0x30] sm:$0xff] %v2339_v47   ;;  %v1765_v40 = vadd.f32 %v3429_v63, %v1581_v13  ;;  %v2606_v17 = vadd.f32 %v2605_v35, %v2604_v30  ;;  %v1584_v24 = vadd.f32 %v1583_v5, %v3444_v29  ;;  %v1452_v58 = vadd.f32 %v2603_v52, %v3362_v60 }
 0x1d4   : > { %v1768_v53 = vadd.f32 %v3429_v63, %v1592_v31  ;;  %v1799_v49 = vmax.f32 %v1767_v56, 0.0 }
 0x1d5   : > { %v1766_v6 = vadd.f32 %v3429_v63, %v1584_v24  ;;  %v1455_v46 = vadd.f32 %v2606_v17, %v3364_v2  ;;  %v1797_v3 = vmax.f32 %v1765_v40, 0.0 }
 0x1d6   : > { %v1800_v27 = vmax.f32 %v1768_v53, 0.0 }
 0x1d7   : > { %v1798_v45 = vmax.f32 %v1766_v6, 0.0  ;;  %v2607_v48 = vpop.f32.mrb[68].mxu1  ;;  %v2687_v50 = vpop.f32.mrb[68].mxu0 }
 0x1d8   : > { %v2354_v54 = vpack.c.bf16 %v1800_v27, %v1799_v49  ;;  %v1605_v34 = vadd.f32 %v2687_v50, %v1444_v33  ;;  %v2608_v15 = vpop.f32.mrb[69].mxu1  ;;  %v1596_v29 = vpop.f32.mrb[69].mxu0 }
 0x1d9   : > { %v2349_v57 = vpack.c.bf16 %v1798_v45, %v1797_v3  ;;  %v2609_v60 = vadd.f32 %v2608_v15, %v2607_v48  ;;  %v1597_v55 = vadd.f32 %v1596_v29, %v3473_v22  ;;  %v2610_v23 = vpop.f32.mrb[70].mxu1  ;;  %v2688_v59 = vpop.f32.mrb[70].mxu0 }
 0x1da   : > { %2394 = vst [vmem:[%s3448_s7 + $0x48] sm:$0xff] %v2354_v54   ;;  %v1771_v2 = vadd.f32 %v3429_v63, %v1605_v34  ;;  %v1608_v42 = vadd.f32 %v2688_v59, %v1447_v12  ;;  %v2611_v36 = vpop.f32.mrb[71].mxu1  ;;  %v1599_v0 = vpop.f32.mrb[71].mxu0 }
 0x1db   : > { %2393 = vst [vmem:[%s3448_s7 + $0x40] sm:$0xff] %v2349_v57   ;;  %v1769_v1 = vadd.f32 %v3429_v63, %v1597_v55  ;;  %v2612_v4 = vadd.f32 %v2611_v36, %v2610_v23  ;;  %v1600_v9 = vadd.f32 %v1599_v0, %v3478_v44  ;;  %v1460_v43 = vadd.f32 %v2609_v60, %v3366_v8 }
 0x1dc   : > { %v1772_v11 = vadd.f32 %v3429_v63, %v1608_v42  ;;  %v1803_v33 = vmax.f32 %v1771_v2, 0.0 }
 0x1dd   : > { %v1770_v22 = vadd.f32 %v3429_v63, %v1600_v9  ;;  %v1463_v39 = vadd.f32 %v2612_v4, %v3368_v14  ;;  %v1801_v37 = vmax.f32 %v1769_v1, 0.0 }
 0x1de   : > { %v1804_v41 = vmax.f32 %v1772_v11, 0.0 }
 0x1df   : > { %v1802_v12 = vmax.f32 %v1770_v22, 0.0  ;;  %v2613_v51 = vpop.f32.mrb[72].mxu1  ;;  %v2691_v18 = vpop.f32.mrb[72].mxu0 }
 0x1e0   : > { %v2364_v16 = vpack.c.bf16 %v1804_v41, %v1803_v33  ;;  %v1621_v25 = vadd.f32 %v2691_v18, %v1460_v43  ;;  %v2614_v62 = vpop.f32.mrb[73].mxu1  ;;  %v1612_v44 = vpop.f32.mrb[73].mxu0 }
 0x1e1   : > { %v2359_v19 = vpack.c.bf16 %v1802_v12, %v1801_v37  ;;  %v2615_v8 = vadd.f32 %v2614_v62, %v2613_v51  ;;  %v1613_v21 = vadd.f32 %v1612_v44, %v1452_v58  ;;  %v2616_v10 = vpop.f32.mrb[74].mxu1  ;;  %v2692_v61 = vpop.f32.mrb[74].mxu0 }
 0x1e2   : > { %2396 = vst [vmem:[%s3448_s7 + $0x58] sm:$0xff] %v2364_v16   ;;  %v1775_v14 = vadd.f32 %v3429_v63, %v1621_v25  ;;  %v1624_v28 = vadd.f32 %v2692_v61, %v1463_v39  ;;  %v2617_v47 = vpop.f32.mrb[75].mxu1  ;;  %v1615_v52 = vpop.f32.mrb[75].mxu0 }
 0x1e3   : > { %2395 = vst [vmem:[%s3448_s7 + $0x50] sm:$0xff] %v2359_v19   ;;  %v1773_v13 = vadd.f32 %v3429_v63, %v1613_v21  ;;  %v2618_v30 = vadd.f32 %v2617_v47, %v2616_v10  ;;  %v1616_v7 = vadd.f32 %v1615_v52, %v1455_v46  ;;  %v1468_v56 = vadd.f32 %v2615_v8, %v3370_v20 }
 0x1e4   : > { %v1776_v31 = vadd.f32 %v3429_v63, %v1624_v28  ;;  %v1807_v40 = vmax.f32 %v1775_v14, 0.0 }
 0x1e5   : > { %v1774_v35 = vadd.f32 %v3429_v63, %v1616_v7  ;;  %v1471_v5 = vadd.f32 %v2618_v30, %v3372_v26  ;;  %v1805_v24 = vmax.f32 %v1773_v13, 0.0 }
 0x1e6   : > { %v1808_v17 = vmax.f32 %v1776_v31, 0.0 }
 0x1e7   : > { %v1806_v58 = vmax.f32 %v1774_v35, 0.0  ;;  %v2619_v53 = vpop.f32.mrb[76].mxu1  ;;  %v2695_v6 = vpop.f32.mrb[76].mxu0 }
 0x1e8   : > { %v2374_v49 = vpack.c.bf16 %v1808_v17, %v1807_v40  ;;  %v2620_v27 = vpop.f32.mrb[77].mxu1  ;;  %v1628_v3 = vpop.f32.mrb[77].mxu0 }
 0x1e9   : > { %v2369_v46 = vpack.c.bf16 %v1806_v58, %v1805_v24  ;;  %v2621_v45 = vadd.f32 %v2620_v27, %v2619_v53  ;;  %v1629_v20 = vadd.f32 %v1628_v3, %v1468_v56  ;;  %v2622_v48 = vpop.f32.mrb[78].mxu1  ;;  %v2696_v50 = vpop.f32.mrb[78].mxu0 }
 0x1ea   : > { %2398 = vst [vmem:[%s3448_s7 + $0x68] sm:$0xff] %v2374_v49   ;;  %v2623_v54 = vpop.f32.mrb[79].mxu1  ;;  %v1631_v34 = vpop.f32.mrb[79].mxu0 }
 0x1eb   : > { %2397 = vst [vmem:[%s3448_s7 + $0x60] sm:$0xff] %v2369_v46   ;;  %v1476_v26 = vadd.f32 %v2621_v45, %v3374_v32  ;;  %v1777_v15 = vadd.f32 %v3429_v63, %v1629_v20  ;;  %v2624_v29 = vadd.f32 %v2623_v54, %v2622_v48  ;;  %v1632_v57 = vadd.f32 %v1631_v34, %v1471_v5 }
 0x1ed   : > { %v1637_v60 = vadd.f32 %v2695_v6, %v1476_v26  ;;  %v1479_v55 = vadd.f32 %v2624_v29, %v3376_v38  ;;  %v1778_v23 = vadd.f32 %v3429_v63, %v1632_v57  ;;  %v1809_v2 = vmax.f32 %v1777_v15, 0.0 }
 0x1ef   : > { %v1779_v59 = vadd.f32 %v3429_v63, %v1637_v60  ;;  %v1640_v42 = vadd.f32 %v2696_v50, %v1479_v55  ;;  %v1810_v36 = vmax.f32 %v1778_v23, 0.0 }
 0x1f1   : > { %v1780_v32 = vadd.f32 %v3429_v63, %v1640_v42  ;;  %v2379_v0 = vpack.c.bf16 %v1810_v36, %v1809_v2  ;;  %v1811_v1 = vmax.f32 %v1779_v59, 0.0 }
 0x1f3   : > { %v1812_v4 = vmax.f32 %v1780_v32, 0.0  ;;  %2399 = vst [vmem:[%s3448_s7 + $0x70] sm:$0xff] %v2379_v0  }
 0x1f5   : > { %v2384_v38 = vpack.c.bf16 %v1812_v4, %v1811_v1 }
 0x1f7   : > { %2400 = vst [vmem:[%s3448_s7 + $0x78] sm:$0xff] %v2384_v38  }
 0x1f8   : > { %3018 = shalt.err (!%p3015_p5)
}
 0x1f9   : > { %s3019_s30 = scalar_lea.hbm %s3536_s6, 2048  ;;  %s3023_s20 = scalar_lea.hbm %s3591_s3, 4096 }
 0x1fa   : > { %p3020_p9 = scmp.ne.s32.totalorder %s3536_s6, %s3019_s30  ;;  %p3024_p3 = scmp.lt.u32.totalorder %s3536_s6, %s3591_s3 }
 0x1fb   : > { %p3025_p7 = scmp.lt.u32.totalorder %s3023_s20, %s3019_s30  ;;  %p3027_p4 = scmp.lt.u32.totalorder %s3019_s30, %s3536_s6 }
 0x1fc   : > { %p3021_p1 = pnand %p3020_p9, %p3214_p10 }
 0x1fd   : > { %p3026_p11 = por %p3025_p7, %p3024_p3 }
 0x1fe   : > { %p3022_p2 = pneg %p3021_p1 }
 0x1ff   : > { %p3028_p6 = por %p3027_p4, %p3026_p11 }
 0x201   : > { %p3029_p8 = pnand %p3028_p6, %p3022_p2 }
 0x203   : > { %3032 = shalt.err (!%p3029_p8)
}
 0x204   : > { %s3100_s7 = smov 64   ;;  %s3101_s8 = smov 4  }
 0x205   : > { %2722 = dma.vmem_to_hbm [thread:$0]  (%p3214_p10), %s3538_s10, 2048, %s3536_s6, %s1974_s9, %s3100_s7, %s3100_s7, %s3101_s8  }
 0x206 PF: > { %s2003_s11 = sand.u32 1, %s3071_s12   ;;  %p3608_p12 = scmp.ne.s32.totalorder %s3599_s23, 0 }
 0x207   : > { %p3609_p13 = scmp.ge.s32.totalorder %s3091_s17, 2  ;;  %s2004_s27 = scalar_lea.sflag [#allocation5], %s2003_s11 }
 0x209   : > { %p2733_p0 = pnand %p3609_p13, %p3608_p12 }
 0x20b   : > { %3066 = dma.done.wait (!%p2733_p0), %s2004_s27, 2048  }
 0x20c   : > { %3068 = vsyncadd (!%p2733_p0), %s2004_s27, 4294965248  ;;  %s20_s17 = sadd.s32 1, %s3091_s17   ;;  %s3610_s12 = smov %s3075_s13 }
 0x20d   : > { %p17_p5 = scmp.ge.s32.totalorder %s20_s17, 4   ;;  %s3611_s13 = smov %s3079_s14 }
 0x20e   : > { %s3612_s14 = smov %s3223_s5  ;;  %s3613_s15 = smov %s3087_s16 }
 0x20f   : > { %s3614_s16 = smov %s3616_s28  ;;  %19 = sbr.rel (!%p17_p5) target bundleno = 7 (0x7), region = 93 }
 0x216   :  { %2009 = vsyncpa [#allocation4], 1 }
 0x217   :  { %2011 = vsyncpa [#allocation4 + $0x1], 1 }
 0x218   :  { %2012 = vsyncpa [#allocation7], 1 }
 0x219   :  { %2013 = vsyncpa [#allocation5], 1 }
 0x21a   :  { %2015 = vsyncpa [#allocation5 + $0x1], 1 }

</bundles_post_ra>
